<compile_context>
chip_gen: v5e
topology: v5e:2x2
jax: 0.10.0
libtpu: 0.0.40
codegen_flags: <defaults>
</compile_context>

<pallas_src>
import functools

import jax
import jax.numpy as jnp
from jax.experimental import pallas as pl
from jax.experimental.pallas import tpu as pltpu


# ----------------------------- Pallas kernel ----------------------------- #

def _double_conv_kernel(mask_ref, x_ref, w1_ref, s1_ref, b1_ref,
                        w2_ref, s2_ref, b2_ref, o_ref,
                        xcol1_ref, ymid_ref, xcol2_ref,
                        *, H, W, ipb, Cin, Cmid, Cout, margin_l, margin_r):
    """Fused (conv3x3 -> BN -> ReLU) x 2 for a block of `ipb` images.

    Layout: channel-major, spatial flattened to the lane axis.  Each image occupies a
    contiguous run of P = (H+2)*(W+2) lanes (zero frame included); the whole block has
    a zero left margin of `margin_l` lanes and right margin of `margin_r` lanes.

    mask_ref:  (1, ipb*P)              f32, 1.0 on interior pixels of each padded frame
    x_ref:     (1, Cin, M + ipb*P + Mr) bf16 zero-padded, flattened image block
    w1_ref:    (Cmid, 9*Cin)           bf16, columns ordered (ky, kx, ci)
    s1/b1_ref: (Cmid, 1)               f32 folded-BN scale / bias
    w2_ref:    (Cout, 9*Cmid)          bf16
    s2/b2_ref: (Cout, 1)               f32
    o_ref:     (1, Cout, ipb*P)        f32 output in padded-flattened layout (cropped later)
    scratch:   xcol1 (9*Cin, ipb*P) bf16, ymid (Cmid, M+ipb*P+Mr) bf16,
               xcol2 (9*Cmid, ipb*P) bf16
    """
    Wp = W + 2
    P = (H + 2) * Wp
    LP = ipb * P
    M = margin_l

    mask = mask_ref[...]                                      # (1, LP)

    # ---- conv1: im2col (9 lane-shifted slices) + single bf16 MXU matmul ----
    for ky in range(3):
        for kx in range(3):
            tap = ky * 3 + kx
            s = (ky - 1) * Wp + (kx - 1)                      # constant flat-offset shift
            xcol1_ref[tap * Cin:(tap + 1) * Cin, :] = x_ref[0, :, M + s:M + s + LP]
    acc1 = jnp.dot(w1_ref[...], xcol1_ref[...],
                   preferred_element_type=jnp.float32)        # (Cmid, LP) f32
    # mask zeroes each image's frame pixels -> provides conv2's 'same' padding
    # (and kills any cross-image tap bleed at image boundaries within the block)
    y1 = jnp.maximum(acc1 * s1_ref[...] + b1_ref[...], 0.0) * mask

    # ---- intermediate stays in VMEM (bf16); only the lane margins need zeros ----
    ymid_ref[:, :M] = jnp.zeros((Cmid, M), ymid_ref.dtype)
    ymid_ref[:, M + LP:M + LP + margin_r] = jnp.zeros((Cmid, margin_r), ymid_ref.dtype)
    ymid_ref[:, M:M + LP] = y1.astype(ymid_ref.dtype)

    # ---- conv2: im2col + single bf16 MXU matmul, f32 accumulation ----
    for ky in range(3):
        for kx in range(3):
            tap = ky * 3 + kx
            s = (ky - 1) * Wp + (kx - 1)
            xcol2_ref[tap * Cmid:(tap + 1) * Cmid, :] = ymid_ref[:, M + s:M + s + LP]
    acc2 = jnp.dot(w2_ref[...], xcol2_ref[...],
                   preferred_element_type=jnp.float32)        # (Cout, LP) f32
    # no mask on y2: the padded frame is cropped in the wrapper anyway
    y2 = jnp.maximum(acc2 * s2_ref[...] + b2_ref[...], 0.0)
    o_ref[0, :, :] = y2.astype(o_ref.dtype)


def double_conv_fused(x_nchw, params, *, images_per_block=None):
    """DoubleConv (conv3x3+BN+ReLU twice), fused in one pallas_call. NCHW in / NCHW out."""
    N, Cin, H, W = x_nchw.shape
    Hp, Wp = H + 2, W + 2
    P = Hp * Wp
    Cmid = params['w1'].shape[0]
    Cout = params['w2'].shape[0]
    assert params['w1'].shape[1] == 9 * Cin

    # batch several images into one grid step (amortizes per-step overhead, widens the
    # matmul RHS); keep a leading grid axis so multi-core parts still split blocks.
    if images_per_block is None:
        images_per_block = max(1, min(N, 2048 // P))
    ipb = images_per_block
    nblk = (N + ipb - 1) // ipb
    N_pad = nblk * ipb
    LP = ipb * P

    # lane margins: left one vreg-aligned (ymid interior store), right one is the
    # minimum that keeps every tap slice in bounds (|shift| <= Wp + 1)
    M = ((Wp + 1 + 127) // 128) * 128
    Mr = Wp + 1
    Ltot = M + LP + Mr
    assert M >= Wp + 1

    # zero-pad spatial border, flatten spatial, group ipb images per block along lanes
    x_pad = jnp.pad(x_nchw, ((0, N_pad - N), (0, 0), (1, 1), (1, 1))).reshape(N_pad, Cin, P)
    x_blk = x_pad.reshape(nblk, ipb, Cin, P).transpose(0, 2, 1, 3).reshape(nblk, Cin, LP)
    x_big = jnp.pad(x_blk, ((0, 0), (0, 0), (M, Mr))).astype(jnp.bfloat16)

    hh = jnp.arange(Hp)
    ww = jnp.arange(Wp)
    interior = (((hh >= 1) & (hh <= H))[:, None] &
                ((ww >= 1) & (ww <= W))[None, :])
    mask = jnp.tile(interior.astype(jnp.float32).reshape(1, P), (1, ipb))   # (1, LP)

    kernel = functools.partial(_double_conv_kernel, H=H, W=W, ipb=ipb,
                               Cin=Cin, Cmid=Cmid, Cout=Cout,
                               margin_l=M, margin_r=Mr)

    out_flat = pl.pallas_call(
        kernel,
        out_shape=jax.ShapeDtypeStruct((nblk, Cout, LP), jnp.float32),
        grid_spec=pltpu.PrefetchScalarGridSpec(
            num_scalar_prefetch=0,
            grid=(nblk,),
            in_specs=[
                pl.BlockSpec((1, LP), lambda b: (0, 0)),                 # interior mask
                pl.BlockSpec((1, Cin, Ltot), lambda b: (b, 0, 0)),       # padded image block
                pl.BlockSpec((Cmid, 9 * Cin), lambda b: (0, 0)),         # w1
                pl.BlockSpec((Cmid, 1), lambda b: (0, 0)),               # s1
                pl.BlockSpec((Cmid, 1), lambda b: (0, 0)),               # b1
                pl.BlockSpec((Cout, 9 * Cmid), lambda b: (0, 0)),        # w2
                pl.BlockSpec((Cout, 1), lambda b: (0, 0)),               # s2
                pl.BlockSpec((Cout, 1), lambda b: (0, 0)),               # b2
            ],
            out_specs=pl.BlockSpec((1, Cout, LP), lambda b: (b, 0, 0)),
            scratch_shapes=[
                pltpu.VMEM((9 * Cin, LP), jnp.bfloat16),       # im2col for conv1
                pltpu.VMEM((Cmid, Ltot), jnp.bfloat16),        # zero-margined intermediate
                pltpu.VMEM((9 * Cmid, LP), jnp.bfloat16),      # im2col for conv2
            ]),
        compiler_params=pltpu.CompilerParams(
            dimension_semantics=("parallel",)),
    )(mask, x_big,
      params['w1'], params['s1'].reshape(Cmid, 1), params['b1'].reshape(Cmid, 1),
      params['w2'], params['s2'].reshape(Cout, 1), params['b2'].reshape(Cout, 1))

    # lanes -> (image, Hp, Wp), drop batch padding, crop the zero frame
    out = out_flat.reshape(nblk, Cout, ipb, Hp, Wp).transpose(0, 2, 1, 3, 4)
    out = out.reshape(N_pad, Cout, Hp, Wp)
    return out[:N, :, 1:H + 1, 1:W + 1]


# ------------------------------ JAX glue --------------------------------- #

def _interp_matrix(out_size, in_size):
    """Row-interpolation matrix for bilinear upsample with align_corners=True."""
    if in_size == 1:
        return jnp.ones((out_size, 1), jnp.float32)
    src = jnp.arange(out_size, dtype=jnp.float32) * (in_size - 1) / (out_size - 1)
    lo = jnp.floor(src).astype(jnp.int32)
    hi = jnp.minimum(lo + 1, in_size - 1)
    frac = src - lo.astype(jnp.float32)
    m = jnp.zeros((out_size, in_size), jnp.float32)
    m = m.at[jnp.arange(out_size), lo].add(1.0 - frac)
    m = m.at[jnp.arange(out_size), hi].add(frac)
    return m


def _upsample_pad_concat(x1_nchw, x2_nchw):
    """bilinear(x1, 2x, align_corners=True) -> F.pad -> cat([x2, x1], dim=1), all NCHW."""
    _, _, H1, W1 = x1_nchw.shape
    _, _, H2, W2 = x2_nchw.shape
    Ah = _interp_matrix(2 * H1, H1)
    Aw = _interp_matrix(2 * W1, W1)
    x1_up = jnp.einsum('oh,nchw,pw->ncop', Ah, x1_nchw, Aw)
    diffY = H2 - x1_up.shape[2]
    diffX = W2 - x1_up.shape[3]
    x1_up = jnp.pad(x1_up, ((0, 0), (0, 0),
                            (diffY // 2, diffY - diffY // 2),
                            (diffX // 2, diffX - diffX // 2)))
    return jnp.concatenate([x2_nchw, x1_up], axis=1)


def init_up_params(key, in_channels, out_channels):
    """Deterministic parameters for Up(in_channels, out_channels, bilinear=True)."""
    mid = in_channels // 2
    k1, k2, k3, k4, k5, k6 = jax.random.split(key, 6)
    w1 = 0.1 * jax.random.normal(k1, (mid, in_channels, 3, 3), jnp.float32)        # OIHW
    w2 = 0.1 * jax.random.normal(k2, (out_channels, mid, 3, 3), jnp.float32)       # OIHW
    g1 = 1.0 + 0.05 * jax.random.normal(k3, (mid,), jnp.float32)
    be1 = 0.05 * jax.random.normal(k4, (mid,), jnp.float32)
    g2 = 1.0 + 0.05 * jax.random.normal(k5, (out_channels,), jnp.float32)
    be2 = 0.05 * jax.random.normal(k6, (out_channels,), jnp.float32)
    eps = 1e-5
    # inference-mode BN folding with running_mean=0, running_var=1
    s1 = g1 / jnp.sqrt(1.0 + eps)
    b1 = be1
    s2 = g2 / jnp.sqrt(1.0 + eps)
    b2 = be2
    # OIHW -> (O, 9*I) with column index = (ky*3+kx)*I + ci, matching the kernel's im2col rows
    w1_mat = jnp.transpose(w1, (0, 2, 3, 1)).reshape(mid, 9 * in_channels)
    w2_mat = jnp.transpose(w2, (0, 2, 3, 1)).reshape(out_channels, 9 * mid)
    return dict(w1=w1_mat.astype(jnp.bfloat16), w2=w2_mat.astype(jnp.bfloat16),
                s1=s1, b1=b1, s2=s2, b2=b2,
                w1_oihw=w1, w2_oihw=w2)


def up_forward(x1_nchw, x2_nchw, params):
    """Up.forward(x1, x2): NCHW in, NCHW out (no layout transposes anywhere)."""
    x = _upsample_pad_concat(x1_nchw, x2_nchw)
    return double_conv_fused(x, params)


def up_forward_reference(x1_nchw, x2_nchw, params):
    """Pure-JAX reference (lax.conv, bf16 operands + f32 accumulation like the kernel)."""
    x = _upsample_pad_concat(x1_nchw, x2_nchw)

    def conv_bn_relu(x, w_oihw, s, b):
        y = jax.lax.conv_general_dilated(
            x.astype(jnp.bfloat16), w_oihw.astype(jnp.bfloat16),
            window_strides=(1, 1), padding='SAME',
            dimension_numbers=('NCHW', 'OIHW', 'NCHW'),
            preferred_element_type=jnp.float32)
        y = y * s[None, :, None, None] + b[None, :, None, None]
        return jnp.maximum(y, 0.0)

    y = conv_bn_relu(x, params['w1_oihw'], params['s1'], params['b1'])
    y = conv_bn_relu(y, params['w2_oihw'], params['s2'], params['b2'])
    return y


# --------------------------------- main ----------------------------------- #

if __name__ == "__main__":
    key = jax.random.PRNGKey(0)
    k_x1, k_x2, k_p = jax.random.split(key, 3)

    in_channels, out_channels = 16, 8          # Up(16, 8, bilinear=True) -> mid = 8
    N, H1, W1 = 2, 8, 8
    H2, W2 = 2 * H1, 2 * W1

    x1 = jax.random.normal(k_x1, (N, in_channels // 2, H1, W1), jnp.float32)  # deeper feature
    x2 = jax.random.normal(k_x2, (N, in_channels // 2, H2, W2), jnp.float32)  # skip connection
    params = init_up_params(k_p, in_channels, out_channels)

    out = jax.block_until_ready(jax.jit(up_forward)(x1, x2, params))
    ref = jax.block_until_ready(up_forward_reference(x1, x2, params))

    assert out.shape == (N, out_channels, H2, W2), out.shape
    max_err = float(jnp.max(jnp.abs(out - ref)))
    assert jnp.allclose(out, ref, rtol=2e-2, atol=2e-2), max_err

    print("KERNEL_OK")
</pallas_src>

<mosaic_0001>
module attributes {stable_mosaic.version = 11 : i64} {
  func.func @_double_conv_kernel(%arg0: i32, %arg1: memref<1x648xf32, #tpu.memory_space<vmem>>, %arg2: memref<1x16x795xbf16, #tpu.memory_space<vmem>>, %arg3: memref<8x144xbf16, #tpu.memory_space<vmem>>, %arg4: memref<8x1xf32, #tpu.memory_space<vmem>>, %arg5: memref<8x1xf32, #tpu.memory_space<vmem>>, %arg6: memref<8x72xbf16, #tpu.memory_space<vmem>>, %arg7: memref<8x1xf32, #tpu.memory_space<vmem>>, %arg8: memref<8x1xf32, #tpu.memory_space<vmem>>, %arg9: memref<1x8x648xf32, #tpu.memory_space<vmem>>, %arg10: memref<144x648xbf16, #tpu.memory_space<vmem>>, %arg11: memref<8x795xbf16, #tpu.memory_space<vmem>>, %arg12: memref<72x648xbf16, #tpu.memory_space<vmem>>) attributes {dimension_semantics = [#tpu.dimension_semantics<parallel>], iteration_bounds = array<i64: 1>, scalar_prefetch = 0 : i64, scratch_operands = 3 : i64, tpu.core_type = #tpu.core_type<tc>, window_params = [{pipeline_mode = #tpu.pipeline_mode<synchronous>, transform_indices = @transform_0, window_bounds = array<i64: 1, 648>}, {transform_indices = @transform_1, window_bounds = array<i64: 1, 16, 795>}, {pipeline_mode = #tpu.pipeline_mode<synchronous>, transform_indices = @transform_2, window_bounds = array<i64: 8, 144>}, {pipeline_mode = #tpu.pipeline_mode<synchronous>, transform_indices = @transform_3, window_bounds = array<i64: 8, 1>}, {pipeline_mode = #tpu.pipeline_mode<synchronous>, transform_indices = @transform_4, window_bounds = array<i64: 8, 1>}, {pipeline_mode = #tpu.pipeline_mode<synchronous>, transform_indices = @transform_5, window_bounds = array<i64: 8, 72>}, {pipeline_mode = #tpu.pipeline_mode<synchronous>, transform_indices = @transform_6, window_bounds = array<i64: 8, 1>}, {pipeline_mode = #tpu.pipeline_mode<synchronous>, transform_indices = @transform_7, window_bounds = array<i64: 8, 1>}, {transform_indices = @transform_8, window_bounds = array<i64: 1, 8, 648>}]} {
    %c0 = arith.constant 0 : index
    %c0_0 = arith.constant 0 : index
    %0 = vector.load %arg1[%c0, %c0_0] : memref<1x648xf32, #tpu.memory_space<vmem>>, vector<1x648xf32>
    %c0_1 = arith.constant 0 : index
    %c0_2 = arith.constant 0 : index
    %c109 = arith.constant 109 : index
    %1 = vector.load %arg2[%c0_1, %c0_2, %c109] : memref<1x16x795xbf16, #tpu.memory_space<vmem>>, vector<1x16x648xbf16>
    %2 = vector.shape_cast %1 : vector<1x16x648xbf16> to vector<16x648xbf16>
    %c0_3 = arith.constant 0 : index
    %c0_4 = arith.constant 0 : index
    %3 = vector.load %arg10[%c0_3, %c0_4] : memref<144x648xbf16, #tpu.memory_space<vmem>>, vector<16x648xbf16>
    tpu.vector_store %arg10[%c0_3, %c0_4], %2 {strides = array<i32>} : memref<144x648xbf16, #tpu.memory_space<vmem>>, vector<16x648xbf16>,
    %c0_5 = arith.constant 0 : index
    %c0_6 = arith.constant 0 : index
    %c110 = arith.constant 110 : index
    %4 = vector.load %arg2[%c0_5, %c0_6, %c110] : memref<1x16x795xbf16, #tpu.memory_space<vmem>>, vector<1x16x648xbf16>
    %5 = vector.shape_cast %4 : vector<1x16x648xbf16> to vector<16x648xbf16>
    %c16 = arith.constant 16 : index
    %c0_7 = arith.constant 0 : index
    %6 = vector.load %arg10[%c16, %c0_7] : memref<144x648xbf16, #tpu.memory_space<vmem>>, vector<16x648xbf16>
    tpu.vector_store %arg10[%c16, %c0_7], %5 {strides = array<i32>} : memref<144x648xbf16, #tpu.memory_space<vmem>>, vector<16x648xbf16>,
    %c0_8 = arith.constant 0 : index
    %c0_9 = arith.constant 0 : index
    %c111 = arith.constant 111 : index
    %7 = vector.load %arg2[%c0_8, %c0_9, %c111] : memref<1x16x795xbf16, #tpu.memory_space<vmem>>, vector<1x16x648xbf16>
    %8 = vector.shape_cast %7 : vector<1x16x648xbf16> to vector<16x648xbf16>
    %c32 = arith.constant 32 : index
    %c0_10 = arith.constant 0 : index
    %9 = vector.load %arg10[%c32, %c0_10] : memref<144x648xbf16, #tpu.memory_space<vmem>>, vector<16x648xbf16>
    tpu.vector_store %arg10[%c32, %c0_10], %8 {strides = array<i32>} : memref<144x648xbf16, #tpu.memory_space<vmem>>, vector<16x648xbf16>,
    %c0_11 = arith.constant 0 : index
    %c0_12 = arith.constant 0 : index
    %c127 = arith.constant 127 : index
    %10 = vector.load %arg2[%c0_11, %c0_12, %c127] : memref<1x16x795xbf16, #tpu.memory_space<vmem>>, vector<1x16x648xbf16>
    %11 = vector.shape_cast %10 : vector<1x16x648xbf16> to vector<16x648xbf16>
    %c48 = arith.constant 48 : index
    %c0_13 = arith.constant 0 : index
    %12 = vector.load %arg10[%c48, %c0_13] : memref<144x648xbf16, #tpu.memory_space<vmem>>, vector<16x648xbf16>
    tpu.vector_store %arg10[%c48, %c0_13], %11 {strides = array<i32>} : memref<144x648xbf16, #tpu.memory_space<vmem>>, vector<16x648xbf16>,
    %c0_14 = arith.constant 0 : index
    %c0_15 = arith.constant 0 : index
    %c128 = arith.constant 128 : index
    %13 = vector.load %arg2[%c0_14, %c0_15, %c128] : memref<1x16x795xbf16, #tpu.memory_space<vmem>>, vector<1x16x648xbf16>
    %14 = vector.shape_cast %13 : vector<1x16x648xbf16> to vector<16x648xbf16>
    %c64 = arith.constant 64 : index
    %c0_16 = arith.constant 0 : index
    %15 = vector.load %arg10[%c64, %c0_16] : memref<144x648xbf16, #tpu.memory_space<vmem>>, vector<16x648xbf16>
    tpu.vector_store %arg10[%c64, %c0_16], %14 {strides = array<i32>} : memref<144x648xbf16, #tpu.memory_space<vmem>>, vector<16x648xbf16>,
    %c0_17 = arith.constant 0 : index
    %c0_18 = arith.constant 0 : index
    %c129 = arith.constant 129 : index
    %16 = vector.load %arg2[%c0_17, %c0_18, %c129] : memref<1x16x795xbf16, #tpu.memory_space<vmem>>, vector<1x16x648xbf16>
    %17 = vector.shape_cast %16 : vector<1x16x648xbf16> to vector<16x648xbf16>
    %c80 = arith.constant 80 : index
    %c0_19 = arith.constant 0 : index
    %18 = vector.load %arg10[%c80, %c0_19] : memref<144x648xbf16, #tpu.memory_space<vmem>>, vector<16x648xbf16>
    tpu.vector_store %arg10[%c80, %c0_19], %17 {strides = array<i32>} : memref<144x648xbf16, #tpu.memory_space<vmem>>, vector<16x648xbf16>,
    %c0_20 = arith.constant 0 : index
    %c0_21 = arith.constant 0 : index
    %c145 = arith.constant 145 : index
    %19 = vector.load %arg2[%c0_20, %c0_21, %c145] : memref<1x16x795xbf16, #tpu.memory_space<vmem>>, vector<1x16x648xbf16>
    %20 = vector.shape_cast %19 : vector<1x16x648xbf16> to vector<16x648xbf16>
    %c96 = arith.constant 96 : index
    %c0_22 = arith.constant 0 : index
    %21 = vector.load %arg10[%c96, %c0_22] : memref<144x648xbf16, #tpu.memory_space<vmem>>, vector<16x648xbf16>
    tpu.vector_store %arg10[%c96, %c0_22], %20 {strides = array<i32>} : memref<144x648xbf16, #tpu.memory_space<vmem>>, vector<16x648xbf16>,
    %c0_23 = arith.constant 0 : index
    %c0_24 = arith.constant 0 : index
    %c146 = arith.constant 146 : index
    %22 = vector.load %arg2[%c0_23, %c0_24, %c146] : memref<1x16x795xbf16, #tpu.memory_space<vmem>>, vector<1x16x648xbf16>
    %23 = vector.shape_cast %22 : vector<1x16x648xbf16> to vector<16x648xbf16>
    %c112 = arith.constant 112 : index
    %c0_25 = arith.constant 0 : index
    %24 = vector.load %arg10[%c112, %c0_25] : memref<144x648xbf16, #tpu.memory_space<vmem>>, vector<16x648xbf16>
    tpu.vector_store %arg10[%c112, %c0_25], %23 {strides = array<i32>} : memref<144x648xbf16, #tpu.memory_space<vmem>>, vector<16x648xbf16>,
    %c0_26 = arith.constant 0 : index
    %c0_27 = arith.constant 0 : index
    %c147 = arith.constant 147 : index
    %25 = vector.load %arg2[%c0_26, %c0_27, %c147] : memref<1x16x795xbf16, #tpu.memory_space<vmem>>, vector<1x16x648xbf16>
    %26 = vector.shape_cast %25 : vector<1x16x648xbf16> to vector<16x648xbf16>
    %c128_28 = arith.constant 128 : index
    %c0_29 = arith.constant 0 : index
    %27 = vector.load %arg10[%c128_28, %c0_29] : memref<144x648xbf16, #tpu.memory_space<vmem>>, vector<16x648xbf16>
    tpu.vector_store %arg10[%c128_28, %c0_29], %26 {strides = array<i32>} : memref<144x648xbf16, #tpu.memory_space<vmem>>, vector<16x648xbf16>,
    %c0_30 = arith.constant 0 : index
    %c0_31 = arith.constant 0 : index
    %28 = vector.load %arg3[%c0_30, %c0_31] : memref<8x144xbf16, #tpu.memory_space<vmem>>, vector<8x144xbf16>
    %c0_32 = arith.constant 0 : index
    %c0_33 = arith.constant 0 : index
    %29 = vector.load %arg10[%c0_32, %c0_33] : memref<144x648xbf16, #tpu.memory_space<vmem>>, vector<144x648xbf16>
    %cst = arith.constant dense<0.000000e+00> : vector<8x648xf32>
    %30 = tpu.matmul %28, %29, %cst {dimension_numbers = #tpu.dot_dimension_numbers<[1], [0], [0], [1], [0, 0, 1, 1], [], []>} : vector<8x144xbf16>, vector<144x648xbf16>, vector<8x648xf32> -> vector<8x648xf32>
    %c0_34 = arith.constant 0 : index
    %c0_35 = arith.constant 0 : index
    %31 = vector.load %arg4[%c0_34, %c0_35] : memref<8x1xf32, #tpu.memory_space<vmem>>, vector<8x1xf32>
    %32 = vector.broadcast %31 : vector<8x1xf32> to vector<8x648xf32>
    %33 = arith.mulf %30, %32 : vector<8x648xf32>
    %c0_36 = arith.constant 0 : index
    %c0_37 = arith.constant 0 : index
    %34 = vector.load %arg5[%c0_36, %c0_37] : memref<8x1xf32, #tpu.memory_space<vmem>>, vector<8x1xf32>
    %35 = vector.broadcast %34 : vector<8x1xf32> to vector<8x648xf32>
    %36 = arith.addf %33, %35 : vector<8x648xf32>
    %cst_38 = arith.constant 0.000000e+00 : f32
    %37 = vector.broadcast %cst_38 : f32 to vector<8x648xf32>
    %38 = arith.maximumf %36, %37 : vector<8x648xf32>
    %39 = vector.broadcast %0 : vector<1x648xf32> to vector<8x648xf32>
    %40 = arith.mulf %38, %39 : vector<8x648xf32>
    %cst_39 = arith.constant 0.000000e+00 : bf16
    %41 = vector.broadcast %cst_39 : bf16 to vector<8x128xbf16>
    %c0_40 = arith.constant 0 : index
    %c0_41 = arith.constant 0 : index
    %42 = vector.load %arg11[%c0_40, %c0_41] : memref<8x795xbf16, #tpu.memory_space<vmem>>, vector<8x128xbf16>
    tpu.vector_store %arg11[%c0_40, %c0_41], %41 {strides = array<i32>} : memref<8x795xbf16, #tpu.memory_space<vmem>>, vector<8x128xbf16>,
    %cst_42 = arith.constant 0.000000e+00 : bf16
    %43 = vector.broadcast %cst_42 : bf16 to vector<8x19xbf16>
    %c0_43 = arith.constant 0 : index
    %c776 = arith.constant 776 : index
    %44 = vector.load %arg11[%c0_43, %c776] : memref<8x795xbf16, #tpu.memory_space<vmem>>, vector<8x19xbf16>
    tpu.vector_store %arg11[%c0_43, %c776], %43 {strides = array<i32>} : memref<8x795xbf16, #tpu.memory_space<vmem>>, vector<8x19xbf16>,
    %45 = arith.truncf %40 : vector<8x648xf32> to vector<8x648xbf16>
    %c0_44 = arith.constant 0 : index
    %c128_45 = arith.constant 128 : index
    %46 = vector.load %arg11[%c0_44, %c128_45] : memref<8x795xbf16, #tpu.memory_space<vmem>>, vector<8x648xbf16>
    tpu.vector_store %arg11[%c0_44, %c128_45], %45 {strides = array<i32>} : memref<8x795xbf16, #tpu.memory_space<vmem>>, vector<8x648xbf16>,
    %c0_46 = arith.constant 0 : index
    %c109_47 = arith.constant 109 : index
    %47 = vector.load %arg11[%c0_46, %c109_47] : memref<8x795xbf16, #tpu.memory_space<vmem>>, vector<8x648xbf16>
    %c0_48 = arith.constant 0 : index
    %c0_49 = arith.constant 0 : index
    %48 = vector.load %arg12[%c0_48, %c0_49] : memref<72x648xbf16, #tpu.memory_space<vmem>>, vector<8x648xbf16>
    tpu.vector_store %arg12[%c0_48, %c0_49], %47 {strides = array<i32>} : memref<72x648xbf16, #tpu.memory_space<vmem>>, vector<8x648xbf16>,
    %c0_50 = arith.constant 0 : index
    %c110_51 = arith.constant 110 : index
    %49 = vector.load %arg11[%c0_50, %c110_51] : memref<8x795xbf16, #tpu.memory_space<vmem>>, vector<8x648xbf16>
    %c8 = arith.constant 8 : index
    %c0_52 = arith.constant 0 : index
    %50 = vector.load %arg12[%c8, %c0_52] : memref<72x648xbf16, #tpu.memory_space<vmem>>, vector<8x648xbf16>
    tpu.vector_store %arg12[%c8, %c0_52], %49 {strides = array<i32>} : memref<72x648xbf16, #tpu.memory_space<vmem>>, vector<8x648xbf16>,
    %c0_53 = arith.constant 0 : index
    %c111_54 = arith.constant 111 : index
    %51 = vector.load %arg11[%c0_53, %c111_54] : memref<8x795xbf16, #tpu.memory_space<vmem>>, vector<8x648xbf16>
    %c16_55 = arith.constant 16 : index
    %c0_56 = arith.constant 0 : index
    %52 = vector.load %arg12[%c16_55, %c0_56] : memref<72x648xbf16, #tpu.memory_space<vmem>>, vector<8x648xbf16>
    tpu.vector_store %arg12[%c16_55, %c0_56], %51 {strides = array<i32>} : memref<72x648xbf16, #tpu.memory_space<vmem>>, vector<8x648xbf16>,
    %c0_57 = arith.constant 0 : index
    %c127_58 = arith.constant 127 : index
    %53 = vector.load %arg11[%c0_57, %c127_58] : memref<8x795xbf16, #tpu.memory_space<vmem>>, vector<8x648xbf16>
    %c24 = arith.constant 24 : index
    %c0_59 = arith.constant 0 : index
    %54 = vector.load %arg12[%c24, %c0_59] : memref<72x648xbf16, #tpu.memory_space<vmem>>, vector<8x648xbf16>
    tpu.vector_store %arg12[%c24, %c0_59], %53 {strides = array<i32>} : memref<72x648xbf16, #tpu.memory_space<vmem>>, vector<8x648xbf16>,
    %c0_60 = arith.constant 0 : index
    %c128_61 = arith.constant 128 : index
    %55 = vector.load %arg11[%c0_60, %c128_61] : memref<8x795xbf16, #tpu.memory_space<vmem>>, vector<8x648xbf16>
    %c32_62 = arith.constant 32 : index
    %c0_63 = arith.constant 0 : index
    %56 = vector.load %arg12[%c32_62, %c0_63] : memref<72x648xbf16, #tpu.memory_space<vmem>>, vector<8x648xbf16>
    tpu.vector_store %arg12[%c32_62, %c0_63], %55 {strides = array<i32>} : memref<72x648xbf16, #tpu.memory_space<vmem>>, vector<8x648xbf16>,
    %c0_64 = arith.constant 0 : index
    %c129_65 = arith.constant 129 : index
    %57 = vector.load %arg11[%c0_64, %c129_65] : memref<8x795xbf16, #tpu.memory_space<vmem>>, vector<8x648xbf16>
    %c40 = arith.constant 40 : index
    %c0_66 = arith.constant 0 : index
    %58 = vector.load %arg12[%c40, %c0_66] : memref<72x648xbf16, #tpu.memory_space<vmem>>, vector<8x648xbf16>
    tpu.vector_store %arg12[%c40, %c0_66], %57 {strides = array<i32>} : memref<72x648xbf16, #tpu.memory_space<vmem>>, vector<8x648xbf16>,
    %c0_67 = arith.constant 0 : index
    %c145_68 = arith.constant 145 : index
    %59 = vector.load %arg11[%c0_67, %c145_68] : memref<8x795xbf16, #tpu.memory_space<vmem>>, vector<8x648xbf16>
    %c48_69 = arith.constant 48 : index
    %c0_70 = arith.constant 0 : index
    %60 = vector.load %arg12[%c48_69, %c0_70] : memref<72x648xbf16, #tpu.memory_space<vmem>>, vector<8x648xbf16>
    tpu.vector_store %arg12[%c48_69, %c0_70], %59 {strides = array<i32>} : memref<72x648xbf16, #tpu.memory_space<vmem>>, vector<8x648xbf16>,
    %c0_71 = arith.constant 0 : index
    %c146_72 = arith.constant 146 : index
    %61 = vector.load %arg11[%c0_71, %c146_72] : memref<8x795xbf16, #tpu.memory_space<vmem>>, vector<8x648xbf16>
    %c56 = arith.constant 56 : index
    %c0_73 = arith.constant 0 : index
    %62 = vector.load %arg12[%c56, %c0_73] : memref<72x648xbf16, #tpu.memory_space<vmem>>, vector<8x648xbf16>
    tpu.vector_store %arg12[%c56, %c0_73], %61 {strides = array<i32>} : memref<72x648xbf16, #tpu.memory_space<vmem>>, vector<8x648xbf16>,
    %c0_74 = arith.constant 0 : index
    %c147_75 = arith.constant 147 : index
    %63 = vector.load %arg11[%c0_74, %c147_75] : memref<8x795xbf16, #tpu.memory_space<vmem>>, vector<8x648xbf16>
    %c64_76 = arith.constant 64 : index
    %c0_77 = arith.constant 0 : index
    %64 = vector.load %arg12[%c64_76, %c0_77] : memref<72x648xbf16, #tpu.memory_space<vmem>>, vector<8x648xbf16>
    tpu.vector_store %arg12[%c64_76, %c0_77], %63 {strides = array<i32>} : memref<72x648xbf16, #tpu.memory_space<vmem>>, vector<8x648xbf16>,
    %c0_78 = arith.constant 0 : index
    %c0_79 = arith.constant 0 : index
    %65 = vector.load %arg6[%c0_78, %c0_79] : memref<8x72xbf16, #tpu.memory_space<vmem>>, vector<8x72xbf16>
    %c0_80 = arith.constant 0 : index
    %c0_81 = arith.constant 0 : index
    %66 = vector.load %arg12[%c0_80, %c0_81] : memref<72x648xbf16, #tpu.memory_space<vmem>>, vector<72x648xbf16>
    %cst_82 = arith.constant dense<0.000000e+00> : vector<8x648xf32>
    %67 = tpu.matmul %65, %66, %cst_82 {dimension_numbers = #tpu.dot_dimension_numbers<[1], [0], [0], [1], [0, 0, 1, 1], [], []>} : vector<8x72xbf16>, vector<72x648xbf16>, vector<8x648xf32> -> vector<8x648xf32>
    %c0_83 = arith.constant 0 : index
    %c0_84 = arith.constant 0 : index
    %68 = vector.load %arg7[%c0_83, %c0_84] : memref<8x1xf32, #tpu.memory_space<vmem>>, vector<8x1xf32>
    %69 = vector.broadcast %68 : vector<8x1xf32> to vector<8x648xf32>
    %70 = arith.mulf %67, %69 : vector<8x648xf32>
    %c0_85 = arith.constant 0 : index
    %c0_86 = arith.constant 0 : index
    %71 = vector.load %arg8[%c0_85, %c0_86] : memref<8x1xf32, #tpu.memory_space<vmem>>, vector<8x1xf32>
    %72 = vector.broadcast %71 : vector<8x1xf32> to vector<8x648xf32>
    %73 = arith.addf %70, %72 : vector<8x648xf32>
    %cst_87 = arith.constant 0.000000e+00 : f32
    %74 = vector.broadcast %cst_87 : f32 to vector<8x648xf32>
    %75 = arith.maximumf %73, %74 : vector<8x648xf32>
    %c0_88 = arith.constant 0 : index
    %c0_89 = arith.constant 0 : index
    %c0_90 = arith.constant 0 : index
    %76 = vector.load %arg9[%c0_88, %c0_89, %c0_90] : memref<1x8x648xf32, #tpu.memory_space<vmem>>, vector<1x8x648xf32>
    %77 = vector.shape_cast %76 : vector<1x8x648xf32> to vector<8x648xf32>
    %78 = vector.shape_cast %75 : vector<8x648xf32> to vector<1x8x648xf32>
    tpu.vector_store %arg9[%c0_88, %c0_89, %c0_90], %78 {strides = array<i32>} : memref<1x8x648xf32, #tpu.memory_space<vmem>>, vector<1x8x648xf32>,
    return
  }
  func.func @transform_0(%arg0: i32) -> (i32, i32) {
    %c0_i32 = arith.constant 0 : i32
    %c0_i32_0 = arith.constant 0 : i32
    %c0_i32_1 = arith.constant 0 : i32
    return %c0_i32, %c0_i32_0 : i32, i32
  }
  func.func @transform_1(%arg0: i32) -> (i32, i32, i32) {
    %c0_i32 = arith.constant 0 : i32
    %c0_i32_0 = arith.constant 0 : i32
    %c0_i32_1 = arith.constant 0 : i32
    return %arg0, %c0_i32, %c0_i32_0 : i32, i32, i32
  }
  func.func @transform_2(%arg0: i32) -> (i32, i32) {
    %c0_i32 = arith.constant 0 : i32
    %c0_i32_0 = arith.constant 0 : i32
    %c0_i32_1 = arith.constant 0 : i32
    return %c0_i32, %c0_i32_0 : i32, i32
  }
  func.func @transform_3(%arg0: i32) -> (i32, i32) {
    %c0_i32 = arith.constant 0 : i32
    %c0_i32_0 = arith.constant 0 : i32
    %c0_i32_1 = arith.constant 0 : i32
    return %c0_i32, %c0_i32_0 : i32, i32
  }
  func.func @transform_4(%arg0: i32) -> (i32, i32) {
    %c0_i32 = arith.constant 0 : i32
    %c0_i32_0 = arith.constant 0 : i32
    %c0_i32_1 = arith.constant 0 : i32
    return %c0_i32, %c0_i32_0 : i32, i32
  }
  func.func @transform_5(%arg0: i32) -> (i32, i32) {
    %c0_i32 = arith.constant 0 : i32
    %c0_i32_0 = arith.constant 0 : i32
    %c0_i32_1 = arith.constant 0 : i32
    return %c0_i32, %c0_i32_0 : i32, i32
  }
  func.func @transform_6(%arg0: i32) -> (i32, i32) {
    %c0_i32 = arith.constant 0 : i32
    %c0_i32_0 = arith.constant 0 : i32
    %c0_i32_1 = arith.constant 0 : i32
    return %c0_i32, %c0_i32_0 : i32, i32
  }
  func.func @transform_7(%arg0: i32) -> (i32, i32) {
    %c0_i32 = arith.constant 0 : i32
    %c0_i32_0 = arith.constant 0 : i32
    %c0_i32_1 = arith.constant 0 : i32
    return %c0_i32, %c0_i32_0 : i32, i32
  }
  func.func @transform_8(%arg0: i32) -> (i32, i32, i32) {
    %c0_i32 = arith.constant 0 : i32
    %c0_i32_0 = arith.constant 0 : i32
    %c0_i32_1 = arith.constant 0 : i32
    return %arg0, %c0_i32, %c0_i32_0 : i32, i32, i32
  }
}

</mosaic_0001>

<bundles_post_ra>
// kernel: up_forward.1
= control target key start
LH: loop header
LB: loop body
LE: loop exit
PB: predicated region body
PF: predicated region fallthrough
CT: control target
= control target key end

     0   :  { %s1970_s11 = smov 110   ;;  %s1971_s18 = smov 111   ;;  %vm61_vm0 = vcmask 1043456   ;;  %vm82_vm1 = vcmask 64516   ;;  %vm408_vm2 = vcmask 900096   ;;  %vm355_vm4 = vcmask 908288   ;;  %s2576_s1 = inlined_call_operand.vmem [shape: bf16[1,16,795], index: 1, kind: input, shape index: {}]   ;;  %s2577_s2 = inlined_call_operand.vmem [shape: bf16[8,144], index: 2, kind: input, shape index: {}]   ;;  %s2578_s4 = inlined_call_operand.vmem [shape: f32[8,1], index: 4, kind: input, shape index: {}]   ;;  %s2579_s3 = inlined_call_operand.vmem [shape: f32[8,1], index: 3, kind: input, shape index: {}]   ;;  %s2580_s0 = inlined_call_operand.vmem [shape: f32[1,648], index: 0, kind: input, shape index: {}]   ;;  %s2581_s6 = inlined_call_operand.vmem [shape: f32[8,1], index: 6, kind: input, shape index: {}]   ;;  %s2582_s7 = inlined_call_operand.vmem [shape: f32[8,1], index: 7, kind: input, shape index: {}]   ;;  %s2583_s5 = inlined_call_operand.vmem [shape: bf16[8,72], index: 5, kind: input, shape index: {}]   ;;  %s2584_s8 = inlined_call_operand.vmem [shape: f32[1,8,648], index: 8, kind: output, shape index: {}]  }
   0x1   :  { %v381_v0 = vld [vmem:[%s2576_s1 + $0x28] sm:$0xff]  ;;  %v379_v1 = vld [vmem:[%s2576_s1 + $0x14] sm:$0xff]  ;;  %v380_v3 = vld [vmem:[%s2576_s1 + $0x20] sm:$0xff]  ;;  %s1972_s19 = smov 109   ;;  %s1973_s20 = smov 127   ;;  %vm461_vm5 = vcmask 891904  }
   0x2   :  { %v377_v2 = vld [vmem:[%s2576_s1 + $0x4] sm:$0xff]  ;;  %397 = vrot.lane.b32.xlu2 %v381_v0, %s1970_s11  ;;  %393 = vrot.lane.b32.xlu1 %v379_v1, %s1970_s11  ;;  %v378_v4 = vld [vmem:[%s2576_s1 + $0xc] sm:$0xff]  ;;  %268 = vst [vmem:[#allocation2 + $0xd8] sm:$0xff] %v380_v3  ;;  %s1974_s25 = smov 1   ;;  %s1975_s13 = smov 17   ;;  %vm2100_vm3 = vmor %vm82_vm1, %vm61_vm0  ;;  %vm302_vm6 = vcmask 1039360  }
   0x3   :  { %265 = vst [vmem:[#allocation2 + $0xc0] sm:$0xff] %v377_v2  ;;  %389 = vrot.lane.b32.xlu0 %v377_v2, %s1970_s11  ;;  %v382_v5 = vld [vmem:[%s2576_s1 + $0x30] sm:$0xff]  ;;  %v195_v6 = vld [vmem:[%s2576_s1 + $0x8] sm:$0xff]  ;;  %v194_v7 = vld [vmem:[%s2576_s1] sm:$0xff]  ;;  %s1976_s14 = smov 18   ;;  %s1977_s15 = smov 19  }
   0x4   :  { %266 = vst [vmem:[#allocation2 + $0xc8] sm:$0xff] %v378_v4  ;;  %v199_v8 = vld [vmem:[%s2576_s1 + $0x24] sm:$0xff]  ;;  %v198_v9 = vld [vmem:[%s2576_s1 + $0x1c] sm:$0xff]  ;;  %v196_v10 = vld [vmem:[%s2576_s1 + $0x10] sm:$0xff]  ;;  %vm235_vm7 = vcmask 7168   ;;  %vm172_vm8 = vcmask 138240  }
   0x5   :  { %269 = vst [vmem:[#allocation2 + $0xe0] sm:$0xff] %v381_v0  ;;  %v200_v11 = vld [vmem:[%s2576_s1 + $0x2c] sm:$0xff]  ;;  %v201_v37 = vld [vmem:[%s2576_s1 + $0x34] sm:$0xf]  ;;  %v197_v41 = vld [vmem:[%s2576_s1 + $0x18] sm:$0xf] }
   0x6   :  { %vm814_vm9 = vcmask 130048   ;;  %vm119_vm10 = vcmask 146432   ;;  %vm63_vm11 = vcmask 154624   ;;  %vm1024_vm12 = vcmask 216128  }
   0x7   :  { %vm1415_vm13 = vcmask 588800   ;;  %vm1550_vm14 = vcmask 64512  }
   0xa   :  { %399 = vrot.lane.b32.xlu2 %v382_v5, %s1970_s11  ;;  %395 = vrot.lane.b32.xlu1 %v380_v3, %s1970_s11 }
   0xb   :  { %391 = vrot.lane.b32.xlu0 %v378_v4, %s1970_s11 }
  0x12   :  { %340 = vrot.lane.b32.xlu2 %v379_v1, %s1971_s18  ;;  %338 = vrot.lane.b32.xlu1 %v378_v4, %s1971_s18 }
  0x13   :  { %336 = vrot.lane.b32.xlu0 %v377_v2, %s1971_s18 }
  0x1a   :  { %346 = vrot.lane.b32.xlu2 %v382_v5, %s1971_s18  ;;  %344 = vrot.lane.b32.xlu1 %v381_v0, %s1971_s18 }
  0x1b   :  { %342 = vrot.lane.b32.xlu0 %v380_v3, %s1971_s18 }
  0x22   :  { %448 = vrot.lane.b32.xlu2 %v380_v3, %s1972_s19  ;;  %444 = vrot.lane.b32.xlu1 %v378_v4, %s1972_s19 }
  0x23   :  { %442 = vrot.lane.b32.xlu0 %v377_v2, %s1972_s19 }
  0x2a   :  { %285 = vrot.lane.b32.xlu2 %v378_v4, %s1973_s20  ;;  %283 = vrot.lane.b32.xlu1 %v377_v2, %s1973_s20 }
  0x2b   :  { %450 = vrot.lane.b32.xlu0 %v381_v0, %s1972_s19 }
  0x32   :  { %291 = vrot.lane.b32.xlu2 %v381_v0, %s1973_s20  ;;  %289 = vrot.lane.b32.xlu1 %v380_v3, %s1973_s20 }
  0x33   :  { %287 = vrot.lane.b32.xlu0 %v379_v1, %s1973_s20 }
  0x3a   :  { %212 = vrot.lane.b32.xlu2 %v195_v6, %s1974_s25  ;;  %210 = vrot.lane.b32.xlu1 %v194_v7, %s1974_s25 }
  0x3b   :  { %293 = vrot.lane.b32.xlu0 %v382_v5, %s1973_s20 }
  0x42   :  { %220 = vrot.lane.b32.xlu2 %v199_v8, %s1974_s25  ;;  %218 = vrot.lane.b32.xlu1 %v198_v9, %s1974_s25 }
  0x43   :  { %214 = vrot.lane.b32.xlu0 %v196_v10, %s1974_s25 }
  0x4a   :  { %155 = vrot.lane.b32.xlu2 %v195_v6, %s1975_s13  ;;  %153 = vrot.lane.b32.xlu1 %v194_v7, %s1975_s13 }
  0x4b   :  { %222 = vrot.lane.b32.xlu0 %v200_v11, %s1974_s25 }
  0x52   :  { %161 = vrot.lane.b32.xlu2 %v199_v8, %s1975_s13  ;;  %159 = vrot.lane.b32.xlu1 %v198_v9, %s1975_s13 }
  0x53   :  { %157 = vrot.lane.b32.xlu0 %v196_v10, %s1975_s13 }
  0x5a   :  { %452 = vrot.lane.b32.xlu2 %v382_v5, %s1972_s19  ;;  %446 = vrot.lane.b32.xlu1 %v379_v1, %s1972_s19 }
  0x5b   :  { %163 = vrot.lane.b32.xlu0 %v200_v11, %s1975_s13 }
  0x5c   :  { %v398_v12 = vpop.permute.xlu2 %397 }
  0x5d   :  { %v405_v13 = vrot.slane %v398_v12, 4 }
  0x62   :  { %102 = vrot.lane.b32.xlu1 %v195_v6, %s1976_s14  ;;  %104 = vrot.lane.b32.xlu2 %v196_v10, %s1976_s14 }
  0x63   :  { %100 = vrot.lane.b32.xlu0 %v194_v7, %s1976_s14 }
  0x64   :  { %v400_v14 = vpop.permute.xlu2 %399 }
  0x65   :  { %v406_v16 = vrot.slane %v400_v14, 4 }
  0x67   :  { %v415_v17 = vsel %vm61_vm0, %v405_v13, %v406_v16  ;;  %v417_v18 = vsel %vm408_vm2, %v400_v14, %v406_v16 }
  0x68   :  { %v416_v19 = vsel %vm408_vm2, %v398_v12, %v415_v17  ;;  %429 = vst.msk [vmem:[#allocation2 + $0x178] sm:$0xff] %vm2100_vm3, %v417_v18 }
  0x69   :  { %428 = vst [vmem:[#allocation2 + $0x170] sm:$0xff] %v416_v19 }
  0x6a   :  { %108 = vrot.lane.b32.xlu1 %v199_v8, %s1976_s14  ;;  %110 = vrot.lane.b32.xlu2 %v200_v11, %s1976_s14 }
  0x6b   :  { %106 = vrot.lane.b32.xlu0 %v198_v9, %s1976_s14 }
  0x6c   :  { %v341_v20 = vpop.permute.xlu2 %340 }
  0x6d   :  { %v350_v21 = vrot.slane %v341_v20, 4 }
  0x6f   :  { %v359_v22 = vsel %vm355_vm4, %v341_v20, %v350_v21 }
  0x70   :  { %373 = vst.msk [vmem:[#allocation2 + $0x130] sm:$0xff] %vm2100_vm3, %v359_v22 }
  0x72   :  { %45 = vrot.lane.b32.xlu1 %v195_v6, %s1977_s15  ;;  %47 = vrot.lane.b32.xlu2 %v196_v10, %s1977_s15 }
  0x73   :  { %43 = vrot.lane.b32.xlu0 %v194_v7, %s1977_s15 }
  0x74   :  { %v394_v23 = vpop.permute.xlu1 %393  ;;  %v347_v24 = vpop.permute.xlu2 %346 }
  0x75   :  { %v403_v25 = vrot.slane %v394_v23, 4  ;;  %v390_v26 = vpop.permute.xlu0 %389  ;;  %v353_v27 = vrot.slane %v347_v24, 4 }
  0x76   :  { %v401_v34 = vrot.slane %v390_v26, 4 }
  0x77   :  { %v412_v28 = vsel %vm408_vm2, %v394_v23, %v403_v25  ;;  %v364_v29 = vsel %vm355_vm4, %v347_v24, %v353_v27 }
  0x78   :  { %426 = vst.msk [vmem:[#allocation2 + $0x160] sm:$0xff] %vm2100_vm3, %v412_v28 }
  0x79   :  { %376 = vst.msk [vmem:[#allocation2 + $0x148] sm:$0xff] %vm2100_vm3, %v364_v29 }
  0x7a   :  { %51 = vrot.lane.b32.xlu1 %v199_v8, %s1977_s15  ;;  %53 = vrot.lane.b32.xlu2 %v200_v11, %s1977_s15 }
  0x7b   :  { %49 = vrot.lane.b32.xlu0 %v198_v9, %s1977_s15 }
  0x7c   :  { %v396_v30 = vpop.permute.xlu1 %395  ;;  %v2127_v31 = vpop.permute.xlu2 %448 }
  0x7d   :  { %v404_v32 = vrot.slane %v396_v30, 4  ;;  %v392_v33 = vpop.permute.xlu0 %391  ;;  %v457_v19 = vrot.slane %v2127_v31, 4 }
  0x7e   :  { %v402_v35 = vrot.slane %v392_v33, 4 }
  0x7f   :  { %v413_v36 = vsel %vm61_vm0, %v404_v32, %v405_v13 }
  0x80   :  { %v414_v38 = vsel %vm408_vm2, %v396_v30, %v413_v36  ;;  %v407_v39 = vsel %vm61_vm0, %v401_v34, %v402_v35  ;;  %v410_v40 = vsel %vm61_vm0, %v402_v35, %v403_v25 }
  0x81   :  { %427 = vst [vmem:[#allocation2 + $0x168] sm:$0xff] %v414_v38  ;;  %v409_v42 = vsel %vm408_vm2, %v390_v26, %v407_v39  ;;  %v411_v43 = vsel %vm408_vm2, %v392_v33, %v410_v40 }
  0x82   :  { %424 = vst [vmem:[#allocation2 + $0x150] sm:$0xff] %v409_v42  ;;  %224 = vrot.lane.b32.xlu1 %v201_v37, %s1974_s25  ;;  %v1926_v37 = vld [vmem:[#allocation2 + $0x16c] sm:$0xf0] }
  0x83   :  { %425 = vst [vmem:[#allocation2 + $0x158] sm:$0xff] %v411_v43  ;;  %216 = vrot.lane.b32.xlu0 %v197_v41, %s1974_s25 }
  0x84   :  { %v339_v44 = vpop.permute.xlu1 %338  ;;  %v2143_v45 = vpop.permute.xlu2 %285 }
  0x85   :  { %v349_v46 = vrot.slane %v339_v44, 4  ;;  %v337_v47 = vpop.permute.xlu0 %336  ;;  %v296_v18 = vrot.slane %v2143_v45, 4 }
  0x86   :  { %v348_v48 = vrot.slane %v337_v47, 4 }
  0x87   :  { %v357_v49 = vsel %vm61_vm0, %v349_v46, %v350_v21 }
  0x88   :  { %v358_v50 = vsel %vm355_vm4, %v339_v44, %v357_v49  ;;  %v354_v51 = vsel %vm61_vm0, %v348_v48, %v349_v46  ;;  %v1925_v52 = vld [vmem:[#allocation2 + $0x164] sm:$0xf0]  ;;  %v1728_v53 = vld [vmem:[#allocation2 + $0x168] sm:$0xf0] }
  0x89   :  { %372 = vst [vmem:[#allocation2 + $0x128] sm:$0xff] %v358_v50  ;;  %v356_v54 = vsel %vm355_vm4, %v337_v47, %v354_v51  ;;  %v1726_v55 = vld [vmem:[#allocation2 + $0x150] sm:$0xf]  ;;  %v1922_v56 = vld [vmem:[#allocation2 + $0x154] sm:$0xf] }
  0x8a   :  { %371 = vst [vmem:[#allocation2 + $0x120] sm:$0xff] %v356_v54  ;;  %v1727_v57 = vor.u32 %v1925_v52, %v1726_v55  ;;  %v1731_v58 = vor.u32 %v1922_v56, %v1728_v53  ;;  %v1734_v42 = vld [vmem:[#allocation2 + $0x158] sm:$0xf] }
  0x8b   :  { %v1735_v50 = vor.u32 %v1926_v37, %v1734_v42  ;;  %v2222_v37 = vld [vmem:[%s2577_s2] sm:$0xff] }
  0x8c   :  { %818 = vmatpush.bf16.msra.mxu0 %v1727_v57  ;;  %844 = vmatpush.bf16.msra.mxu2 %v1731_v58  ;;  %v345_v59 = vpop.permute.xlu1 %344  ;;  %v2149_v60 = vpop.permute.xlu2 %291 }
  0x8d   :  { %v352_v61 = vrot.slane %v345_v59, 4  ;;  %v343_v62 = vpop.permute.xlu0 %342  ;;  %v299_v29 = vrot.slane %v2149_v60, 4 }
  0x8e   :  { %v351_v63 = vrot.slane %v343_v62, 4 }
  0x8f   :  { %v362_v0 = vsel %vm61_vm0, %v352_v61, %v353_v27 }
  0x90   :  { %v363_v1 = vsel %vm355_vm4, %v345_v59, %v362_v0  ;;  %v360_v2 = vsel %vm61_vm0, %v351_v63, %v352_v61  ;;  %v1710_v56 = vld [vmem:[#allocation2 + $0x128] sm:$0xf]  ;;  %v1654_v63 = vld [vmem:[#allocation2 + $0xc0] sm:$0xf]  ;;  %v1907_v0 = vld [vmem:[#allocation2 + $0xd4] sm:$0xf0] }
  0x91   :  { %375 = vst [vmem:[#allocation2 + $0x140] sm:$0xff] %v363_v1  ;;  %v361_v3 = vsel %vm355_vm4, %v343_v62, %v360_v2  ;;  %v1702_v10 = vld [vmem:[#allocation2 + $0x120] sm:$0xf]  ;;  %v1916_v13 = vld [vmem:[#allocation2 + $0x124] sm:$0xf] }
  0x92   :  { %374 = vst [vmem:[#allocation2 + $0x138] sm:$0xff] %v361_v3  ;;  %v1904_v1 = vld [vmem:[#allocation2 + $0xc4] sm:$0xf]  ;;  %v1656_v2 = vld [vmem:[#allocation2 + $0xd8] sm:$0xf0] }
  0x94   :  { %v2155_v4 = vpop.permute.xlu1 %444  ;;  %v2157_v5 = vpop.permute.xlu2 %212 }
  0x95   :  { %v455_v6 = vrot.slane %v2155_v4, 4  ;;  %v443_v7 = vpop.permute.xlu0 %442  ;;  %v227_v49 = vrot.slane %v2157_v5, 4 }
  0x96   :  { %v454_v8 = vrot.slane %v443_v7, 4 }
  0x98   :  { %v460_v9 = vsel %vm61_vm0, %v454_v8, %v455_v6  ;;  %v1920_v53 = vld [vmem:[#allocation2 + $0x13c] sm:$0xf0] }
  0x99   :  { %v462_v11 = vsel %vm461_vm5, %v443_v7, %v460_v9  ;;  %v1919_v12 = vld [vmem:[#allocation2 + $0x134] sm:$0xf0]  ;;  %v1704_v14 = vld [vmem:[#allocation2 + $0x138] sm:$0xf0]  ;;  %v1711_v58 = vor.u32 %v1920_v53, %v1710_v56 }
  0x9a   :  { %477 = vst [vmem:[#allocation2 + $0x180] sm:$0xff] %v462_v11  ;;  %v1703_v16 = vor.u32 %v1919_v12, %v1702_v10  ;;  %v1707_v17 = vor.u32 %v1916_v13, %v1704_v14 }
  0x9c   :  { %819 = vmatpush.bf16.msra.mxu0 %v1703_v16  ;;  %845 = vmatpush.bf16.msra.mxu2 %v1707_v17  ;;  %v284_v20 = vpop.permute.xlu1 %283  ;;  %v2166_v21 = vpop.permute.xlu2 %220 }
  0x9d   :  { %v2168_v22 = vpop.permute.xlu0 %450  ;;  %v295_v23 = vrot.slane %v284_v20, 4  ;;  %v231_v11 = vrot.slane %v2166_v21, 4 }
  0x9e   :  { %v458_v24 = vrot.slane %v2168_v22, 4 }
  0x9f   :  { %v301_v25 = vsel %vm61_vm0, %v295_v23, %v296_v18 }
  0xa0   :  { %v466_v26 = vsel %vm61_vm0, %v457_v19, %v458_v24  ;;  %v303_v27 = vsel %vm302_vm6, %v284_v20, %v301_v25  ;;  %v1655_v19 = vor.u32 %v1907_v0, %v1654_v63  ;;  %v1659_v20 = vor.u32 %v1904_v1, %v1656_v2 }
  0xa1   :  { %v467_v28 = vsel %vm461_vm5, %v2127_v31, %v466_v26  ;;  %318 = vst [vmem:[#allocation2 + $0xf0] sm:$0xff] %v303_v27  ;;  %v1750_v31 = vld [vmem:[#allocation2 + $0x180] sm:$0xf]  ;;  %v1928_v41 = vld [vmem:[#allocation2 + $0x184] sm:$0xf] }
  0xa2   :  { %480 = vst [vmem:[#allocation2 + $0x198] sm:$0xff] %v467_v28 }
  0xa4   :  { %v290_v30 = vpop.permute.xlu1 %289  ;;  %v2179_v32 = vpop.permute.xlu2 %155 }
  0xa5   :  { %v288_v33 = vpop.permute.xlu0 %287  ;;  %v298_v34 = vrot.slane %v290_v30, 4 }
  0xa6   :  { %v297_v35 = vrot.slane %v288_v33, 4 }
  0xa7   :  { %v307_v36 = vsel %vm61_vm0, %v298_v34, %v299_v29  ;;  %v1908_v34 = vld [vmem:[#allocation2 + $0xdc] sm:$0xf0] }
  0xa8   :  { %v304_v38 = vsel %vm61_vm0, %v296_v18, %v297_v35  ;;  %v306_v39 = vsel %vm302_vm6, %v288_v33, %v297_v35  ;;  %v308_v40 = vsel %vm302_vm6, %v290_v30, %v307_v36  ;;  %v1678_v7 = vld [vmem:[#allocation2 + $0xf0] sm:$0xf]  ;;  %v1910_v8 = vld [vmem:[#allocation2 + $0xf4] sm:$0xf]  ;;  %v1662_v33 = vld [vmem:[#allocation2 + $0xc8] sm:$0xf] }
  0xa9   :  { %v305_v43 = vsel %vm302_vm6, %v2143_v45, %v304_v38  ;;  %320 = vst.msk [vmem:[#allocation2 + $0x100] sm:$0xff] %vm2100_vm3, %v306_v39  ;;  %v1931_v44 = vld [vmem:[#allocation2 + $0x194] sm:$0xf0]  ;;  %v1752_v46 = vld [vmem:[#allocation2 + $0x198] sm:$0xf0]  ;;  %v540_v38 = vunpack.c.h.b16 %v2222_v37  ;;  %v166_v39 = vrot.slane %v2179_v32, 4 }
  0xaa   :  { %319 = vst [vmem:[#allocation2 + $0xf8] sm:$0xff] %v305_v43  ;;  %v1751_v47 = vor.u32 %v1931_v44, %v1750_v31  ;;  %v1755_v48 = vor.u32 %v1928_v41, %v1752_v46 }
  0xab   :  { %321 = vst [vmem:[#allocation2 + $0x108] sm:$0xff] %v308_v40  ;;  %v2228_v41 = vpack.c.b16 %v540_v38, %v540_v38 }
  0xac   :  { %838 = vmatpush.bf16.msra.mxu1 %v1751_v47  ;;  %864 = vmatpush.bf16.msra.mxu3 %v1755_v48  ;;  %v211_v51 = vpop.permute.xlu1 %210  ;;  %v2190_v52 = vpop.permute.xlu2 %161 }
  0xad   :  { %v294_v45 = vpop.permute.xlu0 %293  ;;  %v226_v54 = vrot.slane %v211_v51, 4 }
  0xae   :  { %v300_v55 = vrot.slane %v294_v45, 4 }
  0xaf   :  { %v234_v57 = vsel %vm61_vm0, %v226_v54, %v227_v49  ;;  %1773 = vmatmul.msk.bf16.vlgmr.msra.gmra.mxu3 %vm814_vm9, %v2228_v41  ;;  %1772 = vmatmul.msk.bf16.vlgmr.msra.gmra.mxu1 %vm814_vm9, %v2228_v41 }
  0xb0   :  { %870 = vmatpush.bf16.msrb.mxu1 %v1735_v50  ;;  %v309_v59 = vsel %vm61_vm0, %v299_v29, %v300_v55  ;;  %v311_v61 = vsel %vm302_vm6, %v294_v45, %v300_v55  ;;  %v236_v62 = vsel %vm235_vm7, %v211_v51, %v234_v57 }
  0xb1   :  { %v310_v3 = vsel %vm302_vm6, %v2149_v60, %v309_v59  ;;  %323 = vst.msk [vmem:[#allocation2 + $0x118] sm:$0xff] %vm2100_vm3, %v311_v61 }
  0xb2   :  { %322 = vst [vmem:[#allocation2 + $0x110] sm:$0xff] %v310_v3  ;;  %v1913_v9 = vld [vmem:[#allocation2 + $0x104] sm:$0xf0]  ;;  %v1680_v10 = vld [vmem:[#allocation2 + $0x108] sm:$0xf0] }
  0xb3   :  { %253 = vst [vmem:[#allocation2 + $0x90] sm:$0xff] %v236_v62  ;;  %v1679_v12 = vor.u32 %v1913_v9, %v1678_v7  ;;  %v1683_v13 = vor.u32 %v1910_v8, %v1680_v10 }
  0xb4   :  { %871 = vmatpush.bf16.msrb.mxu1 %v1711_v58  ;;  %v219_v14 = vpop.permute.xlu1 %218  ;;  %v453_v16 = vpop.permute.xlu2 %452  ;;  %v169_v58 = vrot.slane %v2190_v52, 4 }
  0xb5   :  { %820 = vmatpush.bf16.msra.mxu0 %v1679_v12  ;;  %846 = vmatpush.bf16.msra.mxu2 %v1683_v13  ;;  %v2201_v17 = vpop.permute.xlu0 %214  ;;  %v230_v60 = vrot.slane %v219_v14, 4  ;;  %v459_v18 = vrot.slane %v453_v16, 4 }
  0xb6   :  { %v228_v23 = vrot.slane %v2201_v17, 4 }
  0xb7   :  { %v241_v25 = vsel %vm61_vm0, %v230_v60, %v231_v11  ;;  %v468_v26 = vsel %vm61_vm0, %v458_v24, %v459_v18  ;;  %v470_v27 = vsel %vm461_vm5, %v453_v16, %v459_v18  ;;  %v1686_v24 = vld [vmem:[#allocation2 + $0xf8] sm:$0xf] }
  0xb8   :  { %v237_v28 = vsel %vm61_vm0, %v227_v49, %v228_v23  ;;  %v242_v29 = vsel %vm235_vm7, %v219_v14, %v241_v25  ;;  %v469_v30 = vsel %vm461_vm5, %v2168_v22, %v468_v26  ;;  %482 = vst.msk [vmem:[#allocation2 + $0x1a8] sm:$0xff] %vm2100_vm3, %v470_v27 }
  0xb9   :  { %v238_v35 = vsel %vm235_vm7, %v2157_v5, %v237_v28  ;;  %256 = vst [vmem:[#allocation2 + $0xa8] sm:$0xff] %v242_v29  ;;  %v1914_v36 = vld [vmem:[#allocation2 + $0x10c] sm:$0xf0]  ;;  %821 = vmatpush.bf16.msra.mxu0 %v1655_v19  ;;  %847 = vmatpush.bf16.msra.mxu2 %v1659_v20  ;;  %v1663_v5 = vor.u32 %v1908_v34, %v1662_v33 }
  0xba   :  { %254 = vst [vmem:[#allocation2 + $0x98] sm:$0xff] %v238_v35  ;;  %v1687_v22 = vor.u32 %v1914_v36, %v1686_v24  ;;  %v1630_v48 = vld [vmem:[#allocation2 + $0x90] sm:$0xf]  ;;  %v1898_v49 = vld [vmem:[#allocation2 + $0x94] sm:$0xf] }
  0xbb   :  { %481 = vst [vmem:[#allocation2 + $0x1a0] sm:$0xff] %v469_v30 }
  0xbc   :  { %872 = vmatpush.bf16.msrb.mxu1 %v1687_v22  ;;  %v154_v40 = vpop.permute.xlu1 %153  ;;  %v2226_v31 = vpop.permute.xlu2 %104 }
  0xbd   :  { %v2230_v42 = vpop.permute.xlu0 %222  ;;  %v165_v43 = vrot.slane %v154_v40, 4  ;;  %v114_v44 = vrot.slane %v2226_v31, 4 }
  0xbe   :  { %v232_v46 = vrot.slane %v2230_v42, 4 }
  0xbf   :  { %v171_v47 = vsel %vm61_vm0, %v165_v43, %v166_v39  ;;  %v123_v50 = vsel %vm119_vm10, %v2226_v31, %v114_v44 }
  0xc0   :  { %v243_v51 = vsel %vm61_vm0, %v231_v11, %v232_v46  ;;  %v173_v53 = vsel %vm172_vm8, %v154_v40, %v171_v47  ;;  %v1901_v45 = vld [vmem:[#allocation2 + $0xa4] sm:$0xf0]  ;;  %v1632_v54 = vld [vmem:[#allocation2 + $0xa8] sm:$0xf0]  ;;  %873 = vmatpush.bf16.msrb.mxu1 %v1663_v5  ;;  %137 = vst.msk [vmem:[#allocation2 + $0x40] sm:$0xff] %vm2100_vm3, %v123_v50 }
  0xc1   :  { %v244_v55 = vsel %vm235_vm7, %v2166_v21, %v243_v51  ;;  %188 = vst [vmem:[#allocation2 + $0x60] sm:$0xff] %v173_v53  ;;  %v1631_v56 = vor.u32 %v1901_v45, %v1630_v48  ;;  %v1635_v57 = vor.u32 %v1898_v49, %v1632_v54  ;;  %v1638_v10 = vld [vmem:[#allocation2 + $0x98] sm:$0xf]  ;;  %v1923_v48 = vld [vmem:[#allocation2 + $0x15c] sm:$0xf] }
  0xc2   :  { %257 = vst [vmem:[#allocation2 + $0xb0] sm:$0xff] %v244_v55  ;;  %v1736_v49 = vld [vmem:[#allocation2 + $0x170] sm:$0xf0]  ;;  %v1932_v45 = vld [vmem:[#allocation2 + $0x19c] sm:$0xf0] }
  0xc3   :  { %822 = vmatpush.bf16.msra.mxu0 %v1631_v56  ;;  %848 = vmatpush.bf16.msra.mxu2 %v1635_v57  ;;  %v1739_v55 = vor.u32 %v1923_v48, %v1736_v49  ;;  %v986_v48 = vld [vmem:[%s2578_s4] sm:$0xff] }
  0xc4   :  { %v160_v59 = vpop.permute.xlu1 %159  ;;  %v2252_v61 = vpop.permute.xlu2 %110 }
  0xc5   :  { %v158_v62 = vpop.permute.xlu0 %157  ;;  %v168_v63 = vrot.slane %v160_v59, 4  ;;  %v117_v0 = vrot.slane %v2252_v61, 4 }
  0xc6   :  { %v167_v1 = vrot.slane %v158_v62, 4 }
  0xc7   :  { %v177_v2 = vsel %vm61_vm0, %v168_v63, %v169_v58  ;;  %v128_v21 = vsel %vm119_vm10, %v2252_v61, %v117_v0 }
  0xc8   :  { %v174_v3 = vsel %vm61_vm0, %v166_v39, %v167_v1  ;;  %v176_v7 = vsel %vm172_vm8, %v158_v62, %v167_v1  ;;  %v178_v8 = vsel %vm172_vm8, %v160_v59, %v177_v2  ;;  %140 = vst.msk [vmem:[#allocation2 + $0x58] sm:$0xff] %vm2100_vm3, %v128_v21  ;;  %v1892_v29 = vld [vmem:[#allocation2 + $0x64] sm:$0xf]  ;;  %v1917_v1 = vld [vmem:[#allocation2 + $0x12c] sm:$0xf]  ;;  %v261_v2 = vld [vmem:[%s2576_s1 + $0x14] sm:$0xff] }
  0xc9   :  { %v175_v9 = vsel %vm172_vm8, %v2179_v32, %v174_v3  ;;  %190 = vst.msk [vmem:[#allocation2 + $0x70] sm:$0xff] %vm2100_vm3, %v176_v7  ;;  %v1902_v11 = vld [vmem:[#allocation2 + $0xac] sm:$0xf0]  ;;  %v1712_v59 = vld [vmem:[#allocation2 + $0x140] sm:$0xf0] }
  0xca   :  { %189 = vst [vmem:[#allocation2 + $0x68] sm:$0xff] %v175_v9  ;;  %v1639_v12 = vor.u32 %v1902_v11, %v1638_v10  ;;  %v1715_v7 = vor.u32 %v1917_v1, %v1712_v59  ;;  %v1911_v9 = vld [vmem:[#allocation2 + $0xfc] sm:$0xf]  ;;  %v1905_v10 = vld [vmem:[#allocation2 + $0xcc] sm:$0xf] }
  0xcb   :  { %191 = vst [vmem:[#allocation2 + $0x78] sm:$0xff] %v178_v8  ;;  %v264_v8 = vld [vmem:[%s2576_s1 + $0x30] sm:$0xff]  ;;  %v1664_v11 = vld [vmem:[#allocation2 + $0xe0] sm:$0xf0]  ;;  %v1742_v59 = vld [vmem:[#allocation2 + $0x160] sm:$0xf] }
  0xcc   :  { %874 = vmatpush.bf16.msrb.mxu1 %v1639_v12  ;;  %v447_v13 = vpop.permute.xlu1 %446  ;;  %v2269_v14 = vpop.permute.xlu2 %47  ;;  %267 = vst.msk [vmem:[#allocation2 + $0xd0] sm:$0xff] %vm2100_vm3, %v261_v2 }
  0xcd   :  { %v164_v16 = vpop.permute.xlu0 %163  ;;  %v456_v60 = vrot.slane %v447_v13, 4  ;;  %v57_v20 = vrot.slane %v2269_v14, 4  ;;  %270 = vst.msk [vmem:[#allocation2 + $0xe8] sm:$0xff] %vm2100_vm3, %v264_v8  ;;  %v539_v8 = vunpack.c.l.b16 %v2222_v37 }
  0xce   :  { %v170_v18 = vrot.slane %v164_v16, 4 }
  0xcf   :  { %v463_v19 = vsel %vm61_vm0, %v455_v6, %v456_v60  ;;  %v465_v32 = vsel %vm461_vm5, %v447_v13, %v456_v60  ;;  %v1606_v6 = vld [vmem:[#allocation2 + $0x60] sm:$0xf]  ;;  %v67_v30 = vsel %vm63_vm11, %v2269_v14, %v57_v20 }
  0xd0   :  { %v179_v25 = vsel %vm61_vm0, %v169_v58, %v170_v18  ;;  %v181_v26 = vsel %vm172_vm8, %v164_v16, %v170_v18  ;;  %v464_v27 = vsel %vm461_vm5, %v2155_v4, %v463_v19  ;;  %479 = vst.msk [vmem:[#allocation2 + $0x190] sm:$0xff] %vm2100_vm3, %v465_v32  ;;  %v1667_v19 = vor.u32 %v1905_v10, %v1664_v11 }
  0xd1   :  { %v180_v28 = vsel %vm172_vm8, %v2190_v52, %v179_v25  ;;  %193 = vst.msk [vmem:[#allocation2 + $0x88] sm:$0xff] %vm2100_vm3, %v181_v26  ;;  %v1614_v31 = vld [vmem:[#allocation2 + $0x68] sm:$0xf]  ;;  %v1640_v26 = vld [vmem:[#allocation2 + $0xb0] sm:$0xf0] }
  0xd2   :  { %192 = vst [vmem:[#allocation2 + $0x80] sm:$0xff] %v180_v28  ;;  %v1895_v33 = vld [vmem:[#allocation2 + $0x74] sm:$0xf0]  ;;  %v1608_v4 = vld [vmem:[#allocation2 + $0x78] sm:$0xf0] }
  0xd3   :  { %478 = vst [vmem:[#allocation2 + $0x188] sm:$0xff] %v464_v27  ;;  %v1607_v34 = vor.u32 %v1895_v33, %v1606_v6  ;;  %v1611_v35 = vor.u32 %v1892_v29, %v1608_v4 }
  0xd4   :  { %v103_v24 = vpop.permute.xlu1 %102  ;;  %84 = vst.msk [vmem:[#allocation2 + $0x10] sm:$0xff] %vm2100_vm3, %v67_v30  ;;  %v2292_v52 = vpop.permute.xlu2 %53 }
  0xd5   :  { %823 = vmatpush.bf16.msra.mxu0 %v1607_v34  ;;  %849 = vmatpush.bf16.msra.mxu2 %v1611_v35  ;;  %v113_v36 = vrot.slane %v103_v24, 4  ;;  %v101_v22 = vpop.permute.xlu0 %100  ;;  %v60_v38 = vrot.slane %v2292_v52, 4 }
  0xd6   :  { %v112_v39 = vrot.slane %v101_v22, 4 }
  0xd7   :  { %v121_v40 = vsel %vm61_vm0, %v113_v36, %v114_v44  ;;  %v72_v5 = vsel %vm63_vm11, %v2292_v52, %v60_v38 }
  0xd8   :  { %v122_v43 = vsel %vm119_vm10, %v103_v24, %v121_v40  ;;  %v118_v47 = vsel %vm61_vm0, %v112_v39, %v113_v36  ;;  %87 = vst.msk [vmem:[#allocation2 + $0x28] sm:$0xff] %vm2100_vm3, %v72_v5 }
  0xd9   :  { %136 = vst [vmem:[#allocation2 + $0x38] sm:$0xff] %v122_v43  ;;  %v120_v50 = vsel %vm119_vm10, %v101_v22, %v118_v47  ;;  %v1896_v51 = vld [vmem:[#allocation2 + $0x7c] sm:$0xf0]  ;;  %v1616_v5 = vld [vmem:[#allocation2 + $0x80] sm:$0xf0]  ;;  %v1978_v47 = vmov 0  }
  0xda   :  { %135 = vst [vmem:[#allocation2 + $0x30] sm:$0xff] %v120_v50  ;;  %v1615_v44 = vor.u32 %v1896_v51, %v1614_v31  ;;  %v1758_v53 = vld [vmem:[#allocation2 + $0x188] sm:$0xf]  ;;  %1968 = vset.pattern.permute.xlu0 %v1978_v47  ;;  %v1893_v50 = vld [vmem:[#allocation2 + $0x6c] sm:$0xf]  ;;  %1967 = vset.pattern.permute.xlu2 %v1978_v47 }
  0xdb   :  { %v1759_v54 = vor.u32 %v1932_v45, %v1758_v53  ;;  %1023 = vst [vmem:[#allocation3] sm:$0xf] %v1978_v47  ;;  %989 = vperm.xlu0 %1968, %v986_v48   ;;  %1969 = vset.pattern.permute.xlu1 %v1978_v47  ;;  %v1906_v48 = vld [vmem:[#allocation2 + $0xd4] sm:$0xf] }
  0xdc   :  { %875 = vmatpush.bf16.msrb.mxu1 %v1615_v44  ;;  %v109_v56 = vpop.permute.xlu1 %108  ;;  %v1619_v44 = vor.u32 %v1893_v50, %v1616_v5  ;;  %1025 = vst.msk [vmem:[#allocation3 + $0x18] sm:$0xf] %vm1024_vm12, %v1978_v47  ;;  %v1696_v5 = vld [vmem:[#allocation2 + $0x118] sm:$0xf0] }
  0xdd   :  { %890 = vmatpush.bf16.msrb.mxu3 %v1759_v54  ;;  %v116_v57 = vrot.slane %v109_v56, 4  ;;  %v107_v58 = vpop.permute.xlu0 %106 }
  0xde   :  { %v115_v62 = vrot.slane %v107_v58, 4 }
  0xdf   :  { %v126_v63 = vsel %vm61_vm0, %v116_v57, %v117_v0  ;;  %v1688_v0 = vld [vmem:[#allocation2 + $0x110] sm:$0xf0] }
  0xe0   :  { %v127_v21 = vsel %vm119_vm10, %v109_v56, %v126_v63  ;;  %v124_v3 = vsel %vm61_vm0, %v115_v62, %v116_v57  ;;  %1774 = vmatmul.msk.bf16.vlgmr.msrb.gmra.mxu3 %vm814_vm9, %v2228_v41  ;;  %v1691_v12 = vor.u32 %v1911_v9, %v1688_v0  ;;  %v1590_v25 = vld [vmem:[#allocation2 + $0x38] sm:$0xf]  ;;  %v1887_v54 = vld [vmem:[#allocation2 + $0x3c] sm:$0xf] }
  0xe1   :  { %896 = vmatpush.bf16.msra.mxu3 %v1739_v55  ;;  %139 = vst [vmem:[#allocation2 + $0x50] sm:$0xff] %v127_v21  ;;  %v125_v61 = vsel %vm119_vm10, %v107_v58, %v124_v3  ;;  %v1582_v6 = vld [vmem:[#allocation2 + $0x30] sm:$0xf]  ;;  %v1886_v29 = vld [vmem:[#allocation2 + $0x34] sm:$0xf] }
  0xe2   :  { %138 = vst [vmem:[#allocation2 + $0x48] sm:$0xff] %v125_v61  ;;  %v1929_v58 = vld [vmem:[#allocation2 + $0x18c] sm:$0xf]  ;;  %v1927_v62 = vld [vmem:[#allocation2 + $0x174] sm:$0xf0] }
  0xe3   :  { %v1766_v3 = vld [vmem:[#allocation2 + $0x190] sm:$0xf] }
  0xe4   :  { %v46_v13 = vpop.permute.xlu1 %45 }
  0xe5   :  { %897 = vmatpush.bf16.msra.mxu3 %v1715_v7  ;;  %v56_v16 = vrot.slane %v46_v13, 4  ;;  %v44_v60 = vpop.permute.xlu0 %43  ;;  %v1933_v7 = vld [vmem:[#allocation2 + $0x1a4] sm:$0xf0] }
  0xe6   :  { %v55_v18 = vrot.slane %v44_v60, 4 }
  0xe7   :  { %v65_v32 = vsel %vm61_vm0, %v56_v16, %v57_v20  ;;  %v1899_v20 = vld [vmem:[#allocation2 + $0x9c] sm:$0xf] }
  0xe8   :  { %v66_v27 = vsel %vm63_vm11, %v46_v13, %v65_v32  ;;  %v62_v28 = vsel %vm61_vm0, %v55_v18, %v56_v16  ;;  %v1890_v30 = vld [vmem:[#allocation2 + $0x4c] sm:$0xf0]  ;;  %v1643_v36 = vor.u32 %v1899_v20, %v1640_v26  ;;  %v1592_v45 = vld [vmem:[#allocation2 + $0x50] sm:$0xf0]  ;;  %v1760_v18 = vld [vmem:[#allocation2 + $0x1a0] sm:$0xf0]  ;;  %v2355_v32 = vpack.c.b16 %v539_v8, %v539_v8 }
  0xe9   :  { %898 = vmatpush.bf16.msra.mxu3 %v1691_v12  ;;  %80 = vst [vmem:[#allocation2 + $0x8] sm:$0xff] %v66_v27  ;;  %v64_v33 = vsel %vm63_vm11, %v44_v60, %v62_v28  ;;  %v1889_v4 = vld [vmem:[#allocation2 + $0x44] sm:$0xf0]  ;;  %v1584_v34 = vld [vmem:[#allocation2 + $0x48] sm:$0xf0]  ;;  %v1591_v35 = vor.u32 %v1890_v30, %v1590_v25  ;;  %v1595_v52 = vor.u32 %v1887_v54, %v1592_v45 }
  0xea   :  { %79 = vst [vmem:[#allocation2] sm:$0xff] %v64_v33  ;;  %v1583_v14 = vor.u32 %v1889_v4, %v1582_v6  ;;  %v1587_v24 = vor.u32 %v1886_v29, %v1584_v34  ;;  %v1924_v25 = vld [vmem:[#allocation2 + $0x164] sm:$0xf]  ;;  %v1744_v26 = vld [vmem:[#allocation2 + $0x178] sm:$0xf0] }
  0xeb   :  { %876 = vmatpush.bf16.msrb.mxu1 %v1591_v35  ;;  %v1718_v27 = vld [vmem:[#allocation2 + $0x130] sm:$0xf]  ;;  %v1930_v28 = vld [vmem:[#allocation2 + $0x194] sm:$0xf]  ;;  %v1768_v6 = vld [vmem:[#allocation2 + $0x1a8] sm:$0xf0]  ;;  %v1747_v30 = vor.u32 %v1924_v25, %v1744_v26 }
  0xec   :  { %824 = vmatpush.bf16.msra.mxu0 %v1583_v14  ;;  %850 = vmatpush.bf16.msra.mxu2 %v1587_v24  ;;  %v52_v22 = vpop.permute.xlu1 %51  ;;  %v1921_v29 = vld [vmem:[#allocation2 + $0x144] sm:$0xf0]  ;;  %v1771_v33 = vor.u32 %v1930_v28, %v1768_v6  ;;  %v1918_v34 = vld [vmem:[#allocation2 + $0x134] sm:$0xf]  ;;  %v1720_v35 = vld [vmem:[#allocation2 + $0x148] sm:$0xf0] }
  0xed   :  { %899 = vmatpush.bf16.msra.mxu3 %v1667_v19  ;;  %v59_v39 = vrot.slane %v52_v22, 4  ;;  %v50_v40 = vpop.permute.xlu0 %49  ;;  %v1743_v19 = vor.u32 %v1927_v62, %v1742_v59  ;;  %v1719_v4 = vor.u32 %v1921_v29, %v1718_v27  ;;  %v1915_v14 = vld [vmem:[#allocation2 + $0x114] sm:$0xf0]  ;;  %v974_v24 = vld [vmem:[%s2579_s3] sm:$0xff]  ;;  %v1723_v20 = vor.u32 %v1918_v34, %v1720_v35  ;;  %v1894_v62 = vld [vmem:[#allocation2 + $0x74] sm:$0xf] }
  0xee   :  { %v58_v43 = vrot.slane %v50_v40, 4  ;;  %977 = vperm.xlu2 %1967, %v974_v24   ;;  %v1891_v59 = vld [vmem:[#allocation2 + $0x54] sm:$0xf0] }
  0xef   :  { %v70_v49 = vsel %vm61_vm0, %v59_v39, %v60_v38 }
  0xf0   :  { %v71_v31 = vsel %vm63_vm11, %v52_v22, %v70_v49  ;;  %v68_v51 = vsel %vm61_vm0, %v58_v43, %v59_v39  ;;  %v1566_v2 = vld [vmem:[#allocation2 + $0x8] sm:$0xf]  ;;  %v1881_v21 = vld [vmem:[#allocation2 + $0xc] sm:$0xf]  ;;  %v1670_v22 = vld [vmem:[#allocation2 + $0xd0] sm:$0xf] }
  0xf1   :  { %900 = vmatpush.bf16.msra.mxu3 %v1643_v36  ;;  %86 = vst [vmem:[#allocation2 + $0x20] sm:$0xff] %v71_v31  ;;  %v69_v53 = vsel %vm63_vm11, %v50_v40, %v68_v51  ;;  %v1558_v1 = vld [vmem:[#allocation2] sm:$0xf]  ;;  %v1880_v9 = vld [vmem:[#allocation2 + $0x4] sm:$0xf] }
  0xf2   :  { %85 = vst [vmem:[#allocation2 + $0x18] sm:$0xff] %v69_v53  ;;  %v1694_v36 = vld [vmem:[#allocation2 + $0x100] sm:$0xf]  ;;  %v1909_v39 = vld [vmem:[#allocation2 + $0xe4] sm:$0xf0] }
  0xf3   :  { %v1695_v40 = vor.u32 %v1915_v14, %v1694_v36  ;;  %v1912_v43 = vld [vmem:[#allocation2 + $0x104] sm:$0xf]  ;;  %v1671_v47 = vor.u32 %v1909_v39, %v1670_v22  ;;  %v1672_v49 = vld [vmem:[#allocation2 + $0xe8] sm:$0xf0] }
  0xf4   :  { %v225_v38 = vpop.permute.xlu1 %224  ;;  %v1699_v50 = vor.u32 %v1912_v43, %v1696_v5  ;;  %v1675_v31 = vor.u32 %v1906_v48, %v1672_v49 }
  0xf5   :  { %901 = vmatpush.bf16.msra.mxu3 %v1619_v44  ;;  %v233_v55 = vrot.slane %v225_v38, 4  ;;  %v217_v56 = vpop.permute.xlu0 %216 }
  0xf6   :  { %v229_v57 = vrot.slane %v217_v56, 4 }
  0xf7   :  { %v245_v63 = vsel %vm61_vm0, %v232_v46, %v233_v55  ;;  %v1622_v55 = vld [vmem:[#allocation2 + $0x70] sm:$0xf] }
  0xf8   :  { %v246_v61 = vsel %vm235_vm7, %v2230_v42, %v245_v63  ;;  %v239_v0 = vsel %vm61_vm0, %v228_v23, %v229_v57  ;;  %v1884_v10 = vld [vmem:[#allocation2 + $0x1c] sm:$0xf0]  ;;  %v1568_v11 = vld [vmem:[#allocation2 + $0x20] sm:$0xf0]  ;;  %v1763_v23 = vor.u32 %v1929_v58, %v1760_v18  ;;  %v1624_v57 = vld [vmem:[#allocation2 + $0x88] sm:$0xf0] }
  0xf9   :  { %902 = vmatpush.bf16.msra.mxu3 %v1595_v52  ;;  %258 = vst.msk [vmem:[#allocation2 + $0xb8] sm:$0xff] %vm2100_vm3, %v246_v61  ;;  %v240_v46 = vsel %vm235_vm7, %v2201_v17, %v239_v0  ;;  %v1883_v12 = vld [vmem:[#allocation2 + $0x14] sm:$0xf0]  ;;  %v1560_v13 = vld [vmem:[#allocation2 + $0x18] sm:$0xf0]  ;;  %v1567_v16 = vor.u32 %v1884_v10, %v1566_v2  ;;  %v1571_v37 = vor.u32 %v1881_v21, %v1568_v11 }
  0xfa   :  { %255 = vst.msk [vmem:[#allocation2 + $0xa0] sm:$0xff] %vm2100_vm3, %v240_v46  ;;  %v1559_v42 = vor.u32 %v1883_v12, %v1558_v1  ;;  %v1563_v60 = vor.u32 %v1880_v9, %v1560_v13  ;;  %v1767_v17 = vor.u32 %v1933_v7, %v1766_v3  ;;  %v1897_v52 = vld [vmem:[#allocation2 + $0x84] sm:$0xf0]  ;;  %v1598_v58 = vld [vmem:[#allocation2 + $0x40] sm:$0xf]  ;;  %v1627_v63 = vor.u32 %v1894_v62, %v1624_v57 }
  0xfb   :  { %877 = vmatpush.bf16.msrb.mxu1 %v1567_v16  ;;  %v1623_v56 = vor.u32 %v1897_v52, %v1622_v55  ;;  %v1599_v1 = vor.u32 %v1891_v59, %v1598_v58  ;;  %v1888_v2 = vld [vmem:[#allocation2 + $0x44] sm:$0xf]  ;;  %v1600_v21 = vld [vmem:[#allocation2 + $0x58] sm:$0xf0]  ;;  %v1574_v3 = vld [vmem:[#allocation2 + $0x10] sm:$0xf] }
  0xfc   :  { %825 = vmatpush.bf16.msra.mxu0 %v1559_v42  ;;  %851 = vmatpush.bf16.msra.mxu2 %v1563_v60  ;;  %v1885_v7 = vld [vmem:[#allocation2 + $0x24] sm:$0xf0]  ;;  %v1603_v8 = vor.u32 %v1888_v2, %v1600_v21  ;;  %v1882_v0 = vld [vmem:[#allocation2 + $0x14] sm:$0xf]  ;;  %v1576_v9 = vld [vmem:[#allocation2 + $0x28] sm:$0xf0] }
  0xfd   :  { %903 = vmatpush.bf16.msra.mxu3 %v1571_v37  ;;  %v1575_v61 = vor.u32 %v1885_v7, %v1574_v3  ;;  %v1579_v10 = vor.u32 %v1882_v0, %v1576_v9 }
  0xfe   :  { %878 = vmatmul.bf16.vlgmr.msrb.gmra.mxu1 %v2355_v32 }
  0xff   :  { %942 = vmatpush.bf16.msra.mxu1 %v1767_v17  ;;  %826 = vmatmul.bf16.vlgmr.msra.gmra.mxu0 %v2355_v32 }
 0x100   :  { %916 = vmatpush.bf16.msrb.mxu0 %v1763_v23  ;;  %922 = vmatpush.bf16.msrb.mxu2 %v1743_v19  ;;  %v1903_v44 = vld [vmem:[#allocation2 + $0xb4] sm:$0xf0]  ;;  %v1648_v54 = vld [vmem:[#allocation2 + $0xb8] sm:$0xf0] }
 0x101   :  { %904 = vmatmul.bf16.vlgmr.msra.gmra.mxu3 %v2355_v32  ;;  %852 = vmatmul.bf16.vlgmr.msra.gmra.mxu2 %v2355_v32  ;;  %v1646_v51 = vld [vmem:[#allocation2 + $0xa0] sm:$0xf]  ;;  %v1900_v45 = vld [vmem:[#allocation2 + $0xa4] sm:$0xf] }
 0x102   :  { %v1647_v53 = vor.u32 %v1903_v44, %v1646_v51  ;;  %v1651_v38 = vor.u32 %v1900_v45, %v1648_v54 }
 0x103   :  { %968 = vmatpush.bf16.msrb.mxu1 %v1771_v33 }
 0x104   :  { %948 = vmatpush.bf16.msra.mxu0 %v1747_v30  ;;  %923 = vmatpush.bf16.msrb.mxu2 %v1719_v4 }
 0x108   :  { %949 = vmatpush.bf16.msra.mxu0 %v1723_v20  ;;  %924 = vmatpush.bf16.msrb.mxu2 %v1695_v40 }
 0x10c   :  { %950 = vmatpush.bf16.msra.mxu0 %v1699_v50  ;;  %925 = vmatpush.bf16.msrb.mxu2 %v1671_v47 }
 0x10e   :  { %1776 = vmatmul.msk.bf16.vlgmr.msra.gmra.mxu1 %vm814_vm9, %v2228_v41 }
 0x10f   :  { %1775 = vmatmul.msk.bf16.vlgmr.msrb.gmra.mxu0 %vm814_vm9, %v2228_v41 }
 0x110   :  { %951 = vmatpush.bf16.msra.mxu0 %v1675_v31  ;;  %926 = vmatpush.bf16.msrb.mxu2 %v1647_v53 }
 0x114   :  { %952 = vmatpush.bf16.msra.mxu0 %v1651_v38  ;;  %927 = vmatpush.bf16.msrb.mxu2 %v1623_v56 }
 0x118   :  { %953 = vmatpush.bf16.msra.mxu0 %v1627_v63  ;;  %928 = vmatpush.bf16.msrb.mxu2 %v1599_v1 }
 0x11c   :  { %954 = vmatpush.bf16.msra.mxu0 %v1603_v8  ;;  %929 = vmatpush.bf16.msrb.mxu2 %v1575_v61 }
 0x11e   :  { %1777 = vmatmul.msk.bf16.vlgmr.msrb.gmra.mxu1 %vm814_vm9, %v2228_v41  ;;  %v2375_v41 = vld [vmem:[%s2580_s0] sm:$0x3f] }
 0x11f   :  { %930 = vmatmul.bf16.vlgmr.msrb.gmra.mxu2 %v2355_v32  ;;  %v1005_v34 = vperm.slane %v2375_v41, 0  ;;  %v1006_v35 = vperm.slane %v2375_v41, 1  ;;  %v1007_v51 = vperm.slane %v2375_v41, 2  ;;  %v1008_v44 = vperm.slane %v2375_v41, 3 }
 0x120   :  { %955 = vmatpush.bf16.msra.mxu0 %v1579_v10  ;;  %v1010_v7 = vperm.slane %v2375_v41, 5  ;;  %v1009_v61 = vperm.slane %v2375_v41, 4 }
 0x123   :  { %956 = vmatmul.bf16.vlgmr.msra.gmra.mxu0 %v2355_v32 }
 0x12c   :  { %v840_v11 = vpop.f32.mrf.mxu1 }
 0x132   :  { %v866_v46 = vpop.f32.mrf.mxu3 }
 0x134   :  { %v842_v12 = vpop.f32.mrf.mxu1 }
 0x13a   :  { %v868_v13 = vpop.f32.mrf.mxu3 }
 0x148   :  { %v978_v60 = vpop.permute.xlu2 %977 }
 0x14d   :  { %v990_v25 = vpop.permute.xlu0 %989 }
 0x163   :  { %v892_v16 = vpop.f32.mrf.mxu3 }
 0x16b   :  { %v894_v37 = vpop.f32.mrf.mxu3 }
 0x17b   :  { %v879_v23 = vpop.f32.mrf.mxu1 }
 0x17c   :  { %v827_v42 = vpop.f32.mrf.mxu0  ;;  %v893_v6 = vadd.f32 %v892_v16, %v879_v23 }
 0x17d   :  { %v841_v18 = vadd.f32 %v840_v11, %v827_v42 }
 0x17e   :  { %v982_v14 = vmul.f32 %v978_v60, %v893_v6 }
 0x17f   :  { %v980_v19 = vmul.f32 %v978_v60, %v841_v18 }
 0x180   :  { %v994_v5 = vadd.f32 %v990_v25, %v982_v14 }
 0x181   :  { %v992_v28 = vadd.f32 %v990_v25, %v980_v19 }
 0x182   :  { %v1000_v50 = vmax.f32 %v994_v5, 0.0 }
 0x183   :  { %v881_v30 = vpop.f32.mrf.mxu1  ;;  %v998_v4 = vmax.f32 %v992_v28, 0.0 }
 0x184   :  { %v905_v26 = vpop.f32.mrf.mxu3  ;;  %v853_v27 = vpop.f32.mrf.mxu2  ;;  %v1019_v54 = vmul.f32 %v1007_v51, %v1000_v50 }
 0x185   :  { %v867_v17 = vadd.f32 %v866_v46, %v853_v27  ;;  %v829_v32 = vpop.f32.mrf.mxu0  ;;  %v1017_v22 = vmul.f32 %v1005_v34, %v998_v4 }
 0x187   :  { %v981_v29 = vmul.f32 %v978_v60, %v867_v17 }
 0x189   :  { %v993_v33 = vadd.f32 %v990_v25, %v981_v29 }
 0x18b   :  { %v999_v24 = vmax.f32 %v993_v33, 0.0  ;;  %v944_v48 = vpop.f32.mrf.mxu1 }
 0x18c   :  { %v907_v20 = vpop.f32.mrf.mxu3  ;;  %v855_v36 = vpop.f32.mrf.mxu2 }
 0x18d   :  { %v1018_v39 = vmul.f32 %v1006_v35, %v999_v24  ;;  %v918_v40 = vpop.f32.mrf.mxu0 }
 0x18e   :  { %v919_v47 = vadd.f32 %v918_v40, %v905_v26 }
 0x18f   :  { %v1026_v43 = vpack.c.bf16 %v1018_v39, %v1017_v22 }
 0x190   :  { %v983_v49 = vmul.f32 %v978_v60, %v919_v47 }
 0x191   :  { %1029 = vst [vmem:[#allocation3 + $0x4] sm:$0xff] %v1026_v43  ;;  %1232 = vrot.lane.b32.xlu1 %v1026_v43, %s1972_s19  ;;  %1206 = vrot.lane.b32.xlu0 %v1026_v43, %s1970_s11 }
 0x192   :  { %1154 = vrot.lane.b32.xlu2 %v1026_v43, %s1973_s20  ;;  %1145 = vst [vmem:[#allocation4 + $0x60] sm:$0xff] %v1026_v43  ;;  %v995_v31 = vadd.f32 %v990_v25, %v983_v49 }
 0x193   :  { %v946_v38 = vpop.f32.mrf.mxu1 }
 0x194   :  { %v1001_v53 = vmax.f32 %v995_v31, 0.0 }
 0x195   :  { %v920_v45 = vpop.f32.mrf.mxu0 }
 0x196   :  { %v1020_v52 = vmul.f32 %v1008_v44, %v1001_v53 }
 0x198   :  { %v1110_v55 = vld [vmem:[#allocation3] sm:$0xff]  ;;  %v1027_v56 = vpack.c.bf16 %v1020_v52, %v1019_v54 }
 0x199   :  { %1180 = vrot.lane.b32.xlu1 %v1026_v43, %s1971_s18  ;;  %1118 = vrot.lane.b32.xlu0 %v1110_v55, %s1974_s25 }
 0x19a   :  { %1064 = vrot.lane.b32.xlu2 %v1110_v55, %s1976_s14  ;;  %1030 = vst [vmem:[#allocation3 + $0xc] sm:$0xff] %v1027_v56 }
 0x19b   :  { %1146 = vst [vmem:[#allocation4 + $0x68] sm:$0xff] %v1027_v56  ;;  %v970_v58 = vpop.f32.mrf.mxu1 }
 0x1a0   :  { %v957_v57 = vpop.f32.mrf.mxu0 }
 0x1a1   :  { %v971_v59 = vadd.f32 %v970_v58, %v957_v57  ;;  %1090 = vrot.lane.b32.xlu1 %v1110_v55, %s1975_s13  ;;  %1038 = vrot.lane.b32.xlu0 %v1110_v55, %s1977_s15  ;;  %v1111_v16 = vld [vmem:[#allocation3 + $0x8] sm:$0xff] }
 0x1a2   :  { %v931_v62 = vpop.f32.mrf.mxu2  ;;  %1234 = vrot.lane.b32.xlu2 %v1027_v56, %s1972_s19 }
 0x1a3   :  { %v985_v63 = vmul.f32 %v978_v60, %v971_v59  ;;  %v945_v1 = vadd.f32 %v944_v48, %v931_v62  ;;  %v972_v9 = vpop.f32.mrf.mxu1 }
 0x1a5   :  { %v997_v2 = vadd.f32 %v990_v25, %v985_v63  ;;  %v984_v21 = vmul.f32 %v978_v60, %v945_v1  ;;  %v1515_v60 = vld [vmem:[%s2581_s6] sm:$0xff] }
 0x1a7   :  { %v1003_v3 = vmax.f32 %v997_v2, 0.0  ;;  %v996_v8 = vadd.f32 %v990_v25, %v984_v21 }
 0x1a8   :  { %v959_v0 = vpop.f32.mrf.mxu0 }
 0x1a9   :  { %v1002_v10 = vmax.f32 %v996_v8, 0.0  ;;  %1208 = vrot.lane.b32.xlu1 %v1027_v56, %s1970_s11  ;;  %1156 = vrot.lane.b32.xlu0 %v1027_v56, %s1973_s20  ;;  %v1022_v46 = vmul.f32 %v1010_v7, %v1003_v3 }
 0x1aa   :  { %v933_v11 = vpop.f32.mrf.mxu2  ;;  %1182 = vrot.lane.b32.xlu2 %v1027_v56, %s1971_s18 }
 0x1ab   :  { %v1021_v12 = vmul.f32 %v1009_v61, %v1002_v10 }
 0x1ad   :  { %v1028_v13 = vpack.c.bf16 %v1022_v46, %v1021_v12 }
 0x1af   :  { %1031 = vst.msk [vmem:[#allocation3 + $0x14] sm:$0xff] %vm2100_vm3, %v1028_v13 }
 0x1b1   :  { %1120 = vrot.lane.b32.xlu1 %v1111_v16, %s1974_s25  ;;  %1066 = vrot.lane.b32.xlu0 %v1111_v16, %s1976_s14 }
 0x1b2   :  { %1092 = vrot.lane.b32.xlu2 %v1111_v16, %s1975_s13 }
 0x1b6   :  { %v1228_v37 = vld [vmem:[#allocation3 + $0x14] sm:$0xff] }
 0x1b7   :  { %1147 = vst.msk [vmem:[#allocation4 + $0x70] sm:$0xff] %vm2100_vm3, %v1228_v37  ;;  %v1113_v42 = vld [vmem:[#allocation3 + $0x18] sm:$0xf]  ;;  %v1112_v18 = vld [vmem:[#allocation3 + $0x10] sm:$0xff] }
 0x1b9   :  { %1040 = vrot.lane.b32.xlu1 %v1111_v16, %s1977_s15  ;;  %1158 = vrot.lane.b32.xlu0 %v1228_v37, %s1973_s20 }
 0x1ba   :  { %1236 = vrot.lane.b32.xlu2 %v1228_v37, %s1972_s19 }
 0x1c1   :  { %1184 = vrot.lane.b32.xlu1 %v1228_v37, %s1971_s18  ;;  %1124 = vrot.lane.b32.xlu0 %v1113_v42, %s1974_s25 }
 0x1c2   :  { %1210 = vrot.lane.b32.xlu2 %v1228_v37, %s1970_s11 }
 0x1c9   :  { %1094 = vrot.lane.b32.xlu1 %v1112_v18, %s1975_s13  ;;  %1518 = vperm.xlu0 %1968, %v1515_v60  }
 0x1ca   :  { %1122 = vrot.lane.b32.xlu2 %v1112_v18, %s1974_s25 }
 0x1d1   :  { %1042 = vrot.lane.b32.xlu1 %v1112_v18, %s1977_s15 }
 0x1d2   :  { %1068 = vrot.lane.b32.xlu2 %v1112_v18, %s1976_s14 }
 0x1ec   :  { %v1155_v23 = vpop.permute.xlu2 %1154 }
 0x1ed   :  { %v1160_v56 = vrot.slane %v1155_v23, 4 }
 0x1f4   :  { %v2415_v19 = vpop.permute.xlu2 %1064 }
 0x1f5   :  { %v1070_v11 = vrot.slane %v2415_v19, 4 }
 0x1fc   :  { %v1235_v25 = vpop.permute.xlu2 %1234 }
 0x1fd   :  { %v1239_v17 = vrot.slane %v1235_v25, 4 }
 0x203   :  { %v1233_v26 = vpop.permute.xlu1 %1232  ;;  %v1207_v27 = vpop.permute.xlu0 %1206 }
 0x204   :  { %v1238_v28 = vrot.slane %v1233_v26, 4  ;;  %v2417_v32 = vpop.permute.xlu2 %1182  ;;  %v1212_v57 = vrot.slane %v1207_v27, 4 }
 0x205   :  { %v1187_v14 = vrot.slane %v2417_v32, 4 }
 0x206   :  { %v1241_v41 = vsel %vm61_vm0, %v1238_v28, %v1239_v17 }
 0x207   :  { %v1242_v6 = vsel %vm461_vm5, %v1233_v26, %v1241_v41 }
 0x208   :  { %v1355_v29 = vunpack.c.l.b16 %v1242_v6  ;;  %v1356_v30 = vunpack.c.h.b16 %v1242_v6 }
 0x20a   :  { %v1385_v33 = vpack.c.b16 %v1355_v29, %v1355_v29  ;;  %v1386_v4 = vpack.c.b16 %v1356_v30, %v1356_v30 }
 0x20b   :  { %v1181_v34 = vpop.permute.xlu1 %1180  ;;  %v2421_v35 = vpop.permute.xlu0 %1118 }
 0x20c   :  { %v1186_v24 = vrot.slane %v1181_v34, 4  ;;  %v2424_v20 = vpop.permute.xlu2 %1092  ;;  %v1420_v36 = vsel %vm61_vm0, %v1385_v33, 0  ;;  %v1423_v22 = vsel %vm61_vm0, %v1386_v4, 0  ;;  %v1126_v13 = vrot.slane %v2421_v35, 4 }
 0x20d   :  { %1440 = vmatpush.bf16.msrb.mxu3 %v1420_v36  ;;  %1453 = vmatpush.bf16.msra.mxu2 %v1423_v22  ;;  %v1097_v47 = vrot.slane %v2424_v20, 4  ;;  %v1527_v36 = vld [vmem:[%s2582_s7] sm:$0xff] }
 0x20e   :  { %v1189_v39 = vsel %vm61_vm0, %v1186_v24, %v1187_v14  ;;  %1530 = vperm.xlu1 %1969, %v1527_v36  }
 0x20f   :  { %v1190_v40 = vsel %vm355_vm4, %v1181_v34, %v1189_v39 }
 0x210   :  { %1197 = vst [vmem:[#allocation4 + $0x90] sm:$0xff] %v1190_v40  ;;  %v1828_v40 = vld [vmem:[#allocation4 + $0x60] sm:$0xf] }
 0x213   :  { %v1091_v5 = vpop.permute.xlu1 %1090  ;;  %v2432_v43 = vpop.permute.xlu0 %1038 }
 0x214   :  { %v1096_v48 = vrot.slane %v1091_v5, 4  ;;  %v1237_v49 = vpop.permute.xlu2 %1236 }
 0x215   :  { %v1240_v50 = vrot.slane %v1237_v49, 4 }
 0x216   :  { %v1099_v31 = vsel %vm61_vm0, %v1096_v48, %v1097_v47 }
 0x217   :  { %v1100_v51 = vsel %vm172_vm8, %v1091_v5, %v1099_v31  ;;  %v1243_v44 = vsel %vm61_vm0, %v1239_v17, %v1240_v50  ;;  %v1245_v53 = vsel %vm461_vm5, %v1237_v49, %v1240_v50  ;;  %v1952_v29 = vld [vmem:[#allocation4 + $0x94] sm:$0xf]  ;;  %v1946_v5 = vld [vmem:[#allocation4 + $0x64] sm:$0xf] }
 0x218   :  { %1107 = vst [vmem:[#allocation4 + $0x30] sm:$0xff] %v1100_v51  ;;  %v2442_v45 = vsel %vm461_vm5, %v1235_v25, %v1243_v44 }
 0x219   :  { %v1357_v54 = vunpack.c.l.b16 %v2442_v45  ;;  %1251 = vst.msk [vmem:[#allocation4 + $0xd0] sm:$0xff] %vm2100_vm3, %v1245_v53 }
 0x21b   :  { %v1209_v52 = vpop.permute.xlu1 %1208  ;;  %v2447_v38 = vpop.permute.xlu0 %1156  ;;  %v1387_v55 = vpack.c.b16 %v1357_v54, %v1357_v54 }
 0x21c   :  { %v1213_v58 = vrot.slane %v1209_v52, 4  ;;  %v1211_v59 = vpop.permute.xlu2 %1210  ;;  %v1161_v62 = vrot.slane %v2447_v38, 4 }
 0x21d   :  { %v1214_v63 = vrot.slane %v1211_v59, 4  ;;  %v1426_v1 = vsel %vm61_vm0, %v1387_v55, 0 }
 0x21e   :  { %v1215_v2 = vsel %vm61_vm0, %v1212_v57, %v1213_v58  ;;  %v1163_v21 = vsel %vm61_vm0, %v1160_v56, %v1161_v62  ;;  %1466 = vmatpush.bf16.msra.mxu1 %v1426_v1 }
 0x21f   :  { %v1216_v3 = vsel %vm408_vm2, %v1207_v27, %v1215_v2  ;;  %v1217_v7 = vsel %vm61_vm0, %v1213_v58, %v1214_v63  ;;  %v1219_v8 = vsel %vm408_vm2, %v1211_v59, %v1214_v63  ;;  %v1164_v0 = vsel %vm302_vm6, %v1155_v23, %v1163_v21  ;;  %v1852_v27 = vld [vmem:[#allocation4 + $0x90] sm:$0xf]  ;;  %v1940_v56 = vld [vmem:[#allocation4 + $0x34] sm:$0xf] }
 0x220   :  { %1223 = vst [vmem:[#allocation4 + $0xa8] sm:$0xff] %v1216_v3  ;;  %v1218_v61 = vsel %vm408_vm2, %v1209_v52, %v1217_v7  ;;  %v2460_v9 = vld [vmem:[#allocation4 + $0xd0] sm:$0xff] }
 0x221   :  { %1224 = vst [vmem:[#allocation4 + $0xb0] sm:$0xff] %v1218_v61  ;;  %v1359_v10 = vunpack.c.l.b16 %v2460_v9  ;;  %v1804_v55 = vld [vmem:[#allocation4 + $0x30] sm:$0xf] }
 0x222   :  { %1225 = vst.msk [vmem:[#allocation4 + $0xb8] sm:$0xff] %vm2100_vm3, %v1219_v8 }
 0x223   :  { %1171 = vst [vmem:[#allocation4 + $0x78] sm:$0xff] %v1164_v0  ;;  %v1121_v46 = vpop.permute.xlu1 %1120  ;;  %v1067_v12 = vpop.permute.xlu0 %1066  ;;  %v1389_v60 = vpack.c.b16 %v1359_v10, %v1359_v10  ;;  %v1358_v0 = vunpack.c.h.b16 %v2442_v45  ;;  %v1360_v10 = vunpack.c.h.b16 %v2460_v9 }
 0x224   :  { %v1127_v16 = vrot.slane %v1121_v46, 4  ;;  %v2467_v37 = vpop.permute.xlu2 %1122  ;;  %v1071_v42 = vrot.slane %v1067_v12, 4 }
 0x225   :  { %v1128_v18 = vrot.slane %v2467_v37, 4  ;;  %v1432_v26 = vsel %vm61_vm0, %v1389_v60, 0 }
 0x226   :  { %v1130_v23 = vsel %vm61_vm0, %v1126_v13, %v1127_v16  ;;  %v1073_v25 = vsel %vm61_vm0, %v1070_v11, %v1071_v42  ;;  %1492 = vmatpush.bf16.msrb.mxu0 %v1432_v26 }
 0x227   :  { %v1131_v17 = vsel %vm235_vm7, %v2421_v35, %v1130_v23  ;;  %v1132_v28 = vsel %vm61_vm0, %v1127_v16, %v1128_v18  ;;  %v1074_v41 = vsel %vm119_vm10, %v2415_v19, %v1073_v25  ;;  %v1955_v6 = vld [vmem:[#allocation4 + $0xa4] sm:$0xf0]  ;;  %v1854_v30 = vld [vmem:[#allocation4 + $0xa8] sm:$0xf0]  ;;  %v1044_v19 = vrot.slane %v2432_v43, 4 }
 0x228   :  { %1139 = vst [vmem:[#allocation4 + $0x48] sm:$0xff] %v1131_v17  ;;  %v1133_v33 = vsel %vm235_vm7, %v1121_v46, %v1132_v28  ;;  %v1853_v4 = vor.u32 %v1955_v6, %v1852_v27  ;;  %v1857_v34 = vor.u32 %v1952_v29, %v1854_v30  ;;  %v1388_v16 = vpack.c.b16 %v1358_v0, %v1358_v0  ;;  %v2528_v27 = vld [vmem:[%s2583_s5] sm:$0xf]  ;;  %v1956_v28 = vld [vmem:[#allocation4 + $0xac] sm:$0xf0] }
 0x229   :  { %1140 = vst [vmem:[#allocation4 + $0x50] sm:$0xff] %v1133_v33  ;;  %v1957_v17 = vld [vmem:[#allocation4 + $0xb4] sm:$0xf0] }
 0x22a   :  { %1081 = vst [vmem:[#allocation4 + $0x18] sm:$0xff] %v1074_v41  ;;  %1441 = vmatpush.bf16.msrb.mxu3 %v1853_v4  ;;  %1454 = vmatpush.bf16.msra.mxu2 %v1857_v34  ;;  %v1949_v35 = vld [vmem:[#allocation4 + $0x74] sm:$0xf0]  ;;  %v1830_v24 = vld [vmem:[#allocation4 + $0x78] sm:$0xf0]  ;;  %v1429_v26 = vsel %vm61_vm0, %v1388_v16, 0 }
 0x22b   :  { %v2485_v22 = vpop.permute.xlu1 %1040  ;;  %v1159_v39 = vpop.permute.xlu0 %1158  ;;  %v1829_v31 = vor.u32 %v1949_v35, %v1828_v40  ;;  %v1833_v51 = vor.u32 %v1946_v5, %v1830_v24  ;;  %v1862_v41 = vld [vmem:[#allocation4 + $0xb0] sm:$0xf0]  ;;  %v1870_v4 = vld [vmem:[#allocation4 + $0xb8] sm:$0xf0] }
 0x22c   :  { %v1069_v48 = vpop.permute.xlu2 %1068  ;;  %v1045_v49 = vrot.slane %v2485_v22, 4  ;;  %v1162_v50 = vrot.slane %v1159_v39, 4 }
 0x22d   :  { %v1072_v44 = vrot.slane %v1069_v48, 4 }
 0x22e   :  { %v1047_v53 = vsel %vm61_vm0, %v1044_v19, %v1045_v49  ;;  %v1165_v54 = vsel %vm61_vm0, %v1161_v62, %v1162_v50  ;;  %v1167_v52 = vsel %vm302_vm6, %v1159_v39, %v1162_v50  ;;  %1442 = vmatpush.bf16.msrb.mxu3 %v1829_v31  ;;  %1455 = vmatpush.bf16.msra.mxu2 %v1833_v51  ;;  %v1844_v50 = vld [vmem:[#allocation4 + $0x70] sm:$0xf]  ;;  %v1948_v31 = vld [vmem:[#allocation4 + $0x74] sm:$0xf] }
 0x22f   :  { %v1075_v57 = vsel %vm61_vm0, %v1071_v42, %v1072_v44  ;;  %v1077_v58 = vsel %vm119_vm10, %v1069_v48, %v1072_v44  ;;  %v1048_v59 = vsel %vm63_vm11, %v2432_v43, %v1047_v53  ;;  %1173 = vst.msk [vmem:[#allocation4 + $0x88] sm:$0xff] %vm2100_vm3, %v1167_v52  ;;  %v1943_v63 = vld [vmem:[#allocation4 + $0x44] sm:$0xf0]  ;;  %v1806_v1 = vld [vmem:[#allocation4 + $0x48] sm:$0xf0]  ;;  %v1166_v2 = vsel %vm302_vm6, %v2447_v38, %v1165_v54 }
 0x230   :  { %v1076_v62 = vsel %vm119_vm10, %v1067_v12, %v1075_v57  ;;  %1083 = vst.msk [vmem:[#allocation4 + $0x28] sm:$0xff] %vm2100_vm3, %v1077_v58  ;;  %v1805_v21 = vor.u32 %v1943_v63, %v1804_v55  ;;  %v1809_v3 = vor.u32 %v1940_v56, %v1806_v1  ;;  %v1836_v54 = vld [vmem:[#allocation4 + $0x68] sm:$0xf]  ;;  %v1947_v52 = vld [vmem:[#allocation4 + $0x6c] sm:$0xf] }
 0x231   :  { %1082 = vst [vmem:[#allocation4 + $0x20] sm:$0xff] %v1076_v62  ;;  %v1937_v9 = vld [vmem:[#allocation4 + $0x14] sm:$0xf0]  ;;  %v1782_v13 = vld [vmem:[#allocation4 + $0x18] sm:$0xf0] }
 0x232   :  { %1055 = vst [vmem:[#allocation4] sm:$0xff] %v1048_v59  ;;  %1443 = vmatpush.bf16.msrb.mxu3 %v1805_v21  ;;  %1456 = vmatpush.bf16.msra.mxu2 %v1809_v3  ;;  %v1944_v59 = vld [vmem:[#allocation4 + $0x4c] sm:$0xf0]  ;;  %v1814_v63 = vld [vmem:[#allocation4 + $0x50] sm:$0xf0] }
 0x233   :  { %1172 = vst [vmem:[#allocation4 + $0x80] sm:$0xff] %v1166_v2  ;;  %v1185_v43 = vpop.permute.xlu1 %1184  ;;  %v1125_v7 = vpop.permute.xlu0 %1124 }
 0x234   :  { %v1188_v8 = vrot.slane %v1185_v43, 4  ;;  %v1129_v61 = vrot.slane %v1125_v7, 4 }
 0x236   :  { %v1191_v11 = vsel %vm61_vm0, %v1187_v14, %v1188_v8  ;;  %v1193_v38 = vsel %vm355_vm4, %v1185_v43, %v1188_v8  ;;  %v1134_v46 = vsel %vm61_vm0, %v1128_v18, %v1129_v61  ;;  %v1390_v14 = vpack.c.b16 %v1360_v10, %v1360_v10  ;;  %v1951_v40 = vld [vmem:[#allocation4 + $0x84] sm:$0xf0]  ;;  %v1846_v5 = vld [vmem:[#allocation4 + $0x88] sm:$0xf0] }
 0x237   :  { %v1192_v12 = vsel %vm355_vm4, %v2417_v32, %v1191_v11  ;;  %1199 = vst.msk [vmem:[#allocation4 + $0xa0] sm:$0xff] %vm2100_vm3, %v1193_v38  ;;  %v1135_v45 = vsel %vm235_vm7, %v2467_v37, %v1134_v46  ;;  %v1845_v44 = vor.u32 %v1951_v40, %v1844_v50  ;;  %v1849_v53 = vor.u32 %v1948_v31, %v1846_v5  ;;  %v1939_v11 = vld [vmem:[#allocation4 + $0x24] sm:$0xf0]  ;;  %v1798_v38 = vld [vmem:[#allocation4 + $0x28] sm:$0xf0] }
 0x238   :  { %1198 = vst [vmem:[#allocation4 + $0x98] sm:$0xff] %v1192_v12  ;;  %v1435_v37 = vsel %vm61_vm0, %v1390_v14, 0  ;;  %v1790_v16 = vld [vmem:[#allocation4 + $0x20] sm:$0xf0] }
 0x239   :  { %1141 = vst.msk [vmem:[#allocation4 + $0x58] sm:$0xff] %vm2100_vm3, %v1135_v45  ;;  %v1780_v42 = vld [vmem:[#allocation4] sm:$0xf]  ;;  %v1934_v60 = vld [vmem:[#allocation4 + $0x4] sm:$0xf] }
 0x23a   :  { %v1781_v18 = vor.u32 %v1937_v9, %v1780_v42  ;;  %v1785_v23 = vor.u32 %v1934_v60, %v1782_v13  ;;  %v1838_v48 = vld [vmem:[#allocation4 + $0x80] sm:$0xf0]  ;;  %v1938_v45 = vld [vmem:[#allocation4 + $0x1c] sm:$0xf0] }
 0x23b   :  { %v1095_v25 = vpop.permute.xlu1 %1094  ;;  %v1841_v57 = vor.u32 %v1947_v52, %v1838_v48  ;;  %v1519_v60 = vpop.permute.xlu0 %1518 }
 0x23c   :  { %1444 = vmatpush.bf16.msrb.mxu3 %v1781_v18  ;;  %1457 = vmatpush.bf16.msra.mxu2 %v1785_v23  ;;  %v1098_v32 = vrot.slane %v1095_v25, 4 }
 0x23e   :  { %v1101_v6 = vsel %vm61_vm0, %v1097_v47, %v1098_v32  ;;  %v1103_v29 = vsel %vm172_vm8, %v1095_v25, %v1098_v32  ;;  %v1868_v30 = vld [vmem:[#allocation4 + $0xa0] sm:$0xf]  ;;  %v1954_v33 = vld [vmem:[#allocation4 + $0xa4] sm:$0xf] }
 0x23f   :  { %v1102_v34 = vsel %vm172_vm8, %v2424_v20, %v1101_v6  ;;  %1109 = vst.msk [vmem:[#allocation4 + $0x40] sm:$0xff] %vm2100_vm3, %v1103_v29  ;;  %1874 = vmatmul.msk.bf16.vlgmr.msrb.gmra.mxu3 %vm1415_vm13, %v2528_v27  ;;  %1875 = vmatmul.msk.bf16.vlgmr.msra.gmra.mxu2 %vm1415_vm13, %v2528_v27  ;;  %v1869_v35 = vor.u32 %v1957_v17, %v1868_v30  ;;  %v1860_v47 = vld [vmem:[#allocation4 + $0x98] sm:$0xf]  ;;  %v1953_v36 = vld [vmem:[#allocation4 + $0x9c] sm:$0xf] }
 0x240   :  { %1479 = vmatpush.bf16.msra.mxu3 %v1429_v26  ;;  %1505 = vmatpush.bf16.msrb.mxu2 %v1435_v37  ;;  %v1873_v24 = vor.u32 %v1954_v33, %v1870_v4  ;;  %1108 = vst [vmem:[#allocation4 + $0x38] sm:$0xff] %v1102_v34  ;;  %v1861_v19 = vor.u32 %v1956_v28, %v1860_v47  ;;  %v1950_v20 = vld [vmem:[#allocation4 + $0x7c] sm:$0xf0]  ;;  %v1945_v58 = vld [vmem:[#allocation4 + $0x54] sm:$0xf0] }
 0x241   :  { %v1865_v39 = vor.u32 %v1953_v36, %v1862_v41  ;;  %1493 = vmatpush.bf16.msrb.mxu0 %v1869_v35  ;;  %v1837_v56 = vor.u32 %v1950_v20, %v1836_v54  ;;  %v1822_v3 = vld [vmem:[#allocation4 + $0x58] sm:$0xf0] }
 0x242   :  { %1467 = vmatpush.bf16.msra.mxu1 %v1861_v19 }
 0x243   :  { %v1043_v51 = vpop.permute.xlu1 %1042 }
 0x244   :  { %1506 = vmatpush.bf16.msrb.mxu2 %v1873_v24  ;;  %1480 = vmatpush.bf16.msra.mxu3 %v1865_v39  ;;  %v1046_v55 = vrot.slane %v1043_v51, 4 }
 0x245   :  { %1494 = vmatpush.bf16.msrb.mxu0 %v1845_v44 }
 0x246   :  { %v1049_v1 = vsel %vm61_vm0, %v1045_v49, %v1046_v55  ;;  %v1051_v62 = vsel %vm63_vm11, %v1043_v51, %v1046_v55  ;;  %1468 = vmatpush.bf16.msra.mxu1 %v1837_v56  ;;  %v1820_v2 = vld [vmem:[#allocation4 + $0x40] sm:$0xf]  ;;  %v1942_v21 = vld [vmem:[#allocation4 + $0x44] sm:$0xf] }
 0x247   :  { %v1050_v43 = vsel %vm63_vm11, %v2485_v22, %v1049_v1  ;;  %1057 = vst.msk [vmem:[#allocation4 + $0x10] sm:$0xff] %vm2100_vm3, %v1051_v62  ;;  %v1821_v7 = vor.u32 %v1945_v58, %v1820_v2  ;;  %v1825_v8 = vor.u32 %v1942_v21, %v1822_v3  ;;  %v1812_v61 = vld [vmem:[#allocation4 + $0x38] sm:$0xf]  ;;  %v1941_v0 = vld [vmem:[#allocation4 + $0x3c] sm:$0xf] }
 0x248   :  { %1507 = vmatpush.bf16.msrb.mxu2 %v1849_v53  ;;  %1481 = vmatpush.bf16.msra.mxu3 %v1841_v57  ;;  %1056 = vst [vmem:[#allocation4 + $0x8] sm:$0xff] %v1050_v43  ;;  %v1813_v10 = vor.u32 %v1944_v59, %v1812_v61  ;;  %v1817_v49 = vor.u32 %v1941_v0, %v1814_v63 }
 0x249   :  { %1495 = vmatpush.bf16.msrb.mxu0 %v1821_v7 }
 0x24a   :  { %1469 = vmatpush.bf16.msra.mxu1 %v1813_v10 }
 0x24c   :  { %1508 = vmatpush.bf16.msrb.mxu2 %v1825_v8  ;;  %1482 = vmatpush.bf16.msra.mxu3 %v1817_v49 }
 0x24e   :  { %v1796_v46 = vld [vmem:[#allocation4 + $0x10] sm:$0xf]  ;;  %v1936_v12 = vld [vmem:[#allocation4 + $0x14] sm:$0xf] }
 0x24f   :  { %v1797_v22 = vor.u32 %v1939_v11, %v1796_v46  ;;  %v1801_v9 = vor.u32 %v1936_v12, %v1798_v38  ;;  %v1788_v15 = vld [vmem:[#allocation4 + $0x8] sm:$0xf]  ;;  %v1935_v13 = vld [vmem:[#allocation4 + $0xc] sm:$0xf] }
 0x250   :  { %v1789_v14 = vor.u32 %v1938_v45, %v1788_v15  ;;  %v1793_v42 = vor.u32 %v1935_v13, %v1790_v16 }
 0x251   :  { %1496 = vmatpush.bf16.msrb.mxu0 %v1797_v22  ;;  %1509 = vmatpush.bf16.msrb.mxu2 %v1801_v9 }
 0x252   :  { %1470 = vmatpush.bf16.msra.mxu1 %v1789_v14  ;;  %1483 = vmatpush.bf16.msra.mxu3 %v1793_v42 }
 0x254   :  { %1878 = vmatmul.msk.bf16.vlgmr.msrb.gmra.mxu0 %vm1415_vm13, %v2528_v27  ;;  %1879 = vmatmul.msk.bf16.vlgmr.msrb.gmra.mxu2 %vm1415_vm13, %v2528_v27 }
 0x255   :  { %1876 = vmatmul.msk.bf16.vlgmr.msra.gmra.mxu1 %vm1415_vm13, %v2528_v27  ;;  %1877 = vmatmul.msk.bf16.vlgmr.msra.gmra.mxu3 %vm1415_vm13, %v2528_v27 }
 0x280   :  { %v1531_v18 = vpop.permute.xlu1 %1530 }
 0x2c2   :  { %v1446_v23 = vpop.f32.mrf.mxu3  ;;  %v1459_v25 = vpop.f32.mrf.mxu2 }
 0x2c3   :  { %v1521_v32 = vmul.f32 %v1519_v60, %v1446_v23  ;;  %v1522_v26 = vmul.f32 %v1519_v60, %v1459_v25 }
 0x2c5   :  { %v1533_v37 = vadd.f32 %v1531_v18, %v1521_v32  ;;  %v1534_v17 = vadd.f32 %v1531_v18, %v1522_v26 }
 0x2c7   :  { %v1539_v28 = vmax.f32 %v1533_v37, 0.0  ;;  %v1540_v41 = vmax.f32 %v1534_v17, 0.0 }
 0x2c9   :  { %1545 = vst [vmem:[%s2584_s8] sm:$0xff] %v1539_v28 }
 0x2ca   :  { %1546 = vst [vmem:[%s2584_s8 + $0x8] sm:$0xff] %v1540_v41  ;;  %v1448_v6 = vpop.f32.mrf.mxu3  ;;  %v1461_v27 = vpop.f32.mrf.mxu2 }
 0x2d1   :  { %v1498_v29 = vpop.f32.mrf.mxu0 }
 0x2d2   :  { %v1525_v30 = vmul.f32 %v1519_v60, %v1498_v29  ;;  %v1472_v33 = vpop.f32.mrf.mxu1 }
 0x2d3   :  { %v1523_v4 = vmul.f32 %v1519_v60, %v1472_v33 }
 0x2d4   :  { %v1537_v34 = vadd.f32 %v1531_v18, %v1525_v30 }
 0x2d5   :  { %v1535_v35 = vadd.f32 %v1531_v18, %v1523_v4 }
 0x2d6   :  { %v1543_v24 = vmax.f32 %v1537_v34, 0.0 }
 0x2d7   :  { %v1541_v47 = vmax.f32 %v1535_v35, 0.0  ;;  %v1511_v36 = vpop.f32.mrf.mxu2 }
 0x2d8   :  { %1549 = vst [vmem:[%s2584_s8 + $0x20] sm:$0xff] %v1543_v24  ;;  %v1526_v19 = vmul.f32 %v1519_v60, %v1511_v36  ;;  %v1485_v39 = vpop.f32.mrf.mxu3 }
 0x2d9   :  { %1547 = vst [vmem:[%s2584_s8 + $0x10] sm:$0xff] %v1541_v47  ;;  %v1524_v40 = vmul.f32 %v1519_v60, %v1485_v39  ;;  %v1500_v5 = vpop.f32.mrf.mxu0 }
 0x2da   :  { %v1538_v20 = vadd.f32 %v1531_v18, %v1526_v19  ;;  %v1474_v48 = vpop.f32.mrf.mxu1 }
 0x2db   :  { %v1536_v50 = vadd.f32 %v1531_v18, %v1524_v40 }
 0x2dc   :  { %v1544_v31 = vmax.f32 %v1538_v20, 0.0 }
 0x2dd   :  { %v1542_v51 = vmax.f32 %v1536_v50, 0.0 }
 0x2de   :  { %1551 = vst.msk [vmem:[%s2584_s8 + $0x28] sm:$0xff] %vm1550_vm14, %v1544_v31 }
 0x2df   :  { %1548 = vst [vmem:[%s2584_s8 + $0x18] sm:$0xff] %v1542_v51  ;;  %v1513_v44 = vpop.f32.mrf.mxu2 }
 0x2e0   :  { %v1487_v53 = vpop.f32.mrf.mxu3 }

</bundles_post_ra>
